<compile_context>
chip_gen: v5e
topology: v5e:2x2
jax: 0.10.0
libtpu: 0.0.40
codegen_flags: <defaults>
</compile_context>

<pallas_src>
import functools

import jax
import jax.numpy as jnp
from jax import lax
from jax.experimental import pallas as pl
from jax.experimental.pallas import tpu as pltpu

NEG_SLOPE = 0.01   # nn.LeakyReLU(negative_slope=0.01)
BN_EPS = 1e-5      # PyTorch BatchNorm default eps

_VMEM_LIMIT_CACHE = None


def _vmem_limit():
    """Generation-aware scoped-VMEM request (v7x has 64 MiB physical, v5e/v6e 128 MiB)."""
    global _VMEM_LIMIT_CACHE
    if _VMEM_LIMIT_CACHE is None:
        try:
            cap = int(pltpu.get_tpu_info().vmem_capacity_bytes)
        except Exception:
            cap = 64 * 1024 * 1024
        _VMEM_LIMIT_CACHE = min((cap * 3) // 4, 96 * 1024 * 1024)
    return _VMEM_LIMIT_CACHE


# ----------------------------------------------------------------------------
# Tile pickers
# ----------------------------------------------------------------------------
def _pick_lane_tile(m, k_rows, r_rows, vmem_limit, min_steps=4):
    """Largest lane tile that fits the VMEM budget and still leaves >= min_steps
    grid steps (>=2 per TensorCore on v7x); otherwise the smallest fitting tile."""
    budget = max(vmem_limit // 3, 2 << 20)
    fits = []
    for tl in (8192, 4096, 2048, 1024, 512, 256, 128):
        if m % tl == 0 and 2 * tl * (2 * k_rows + r_rows) <= budget:
            fits.append(tl)
    if not fits:                       # m is always padded to a multiple of 128
        return 128 if m % 128 == 0 else m
    for tl in fits:                    # descending
        if m // tl >= min_steps:
            return tl
    return fits[-1]


def _pick_fc_groups(g_total, n, hw, h1, vmem_limit):
    """Number of grid steps for the fc reduction axis (fewest steps whose per-step
    activation+weight blocks fit the budget, but at least 8 for DMA pipelining)."""
    budget = max(vmem_limit // 4, 2 << 20)
    for gsteps in (8, 16, 32, 64, 128, 256, 512):
        if g_total % gsteps:
            continue
        gt = g_total // gsteps
        if 2 * gt * (n * hw + hw * h1) * 2 <= budget:
            return gsteps
    return g_total


# ----------------------------------------------------------------------------
# Pallas kernels
# ----------------------------------------------------------------------------
def _conv_bn_pool_kernel(g_ref, w_ref, b_ref, s_ref, t_ref, o_ref):
    """One conv stage: y = Wbig @ G  (block-Toeplitz over bins), then
    bias + LeakyReLU + BN affine per (co, bin) row, then MaxPool over bins as
    max(even-bin half rows, odd-bin half rows).  Lane axis = (n, h, w)."""
    y = jnp.dot(w_ref[...], g_ref[...], preferred_element_type=jnp.float32)
    y = y + b_ref[...]
    y = jnp.maximum(y, NEG_SLOPE * y)          # LeakyReLU as a single VPU max
    y = y * s_ref[...] + t_ref[...]
    rh = y.shape[0] // 2
    o_ref[...] = jnp.maximum(y[:rh], y[rh:]).astype(o_ref.dtype)


def _fc_fused_kernel(y_ref, w1_ref, b1_ref, s_ref, t_ref, w2_ref, b2_ref,
                     o_ref, acc_ref, *, gt):
    """fc1 (reduction gridded over (channel,bin) groups, fp32 accumulator) +
    LeakyReLU + BN1d affine + fc2, one kernel.  fc1 runs in bf16 on the MXU."""
    k = pl.program_id(0)

    @pl.when(k == 0)
    def _():
        acc_ref[...] = jnp.zeros_like(acc_ref)

    part = jnp.dot(y_ref[0], w1_ref[0], preferred_element_type=jnp.float32)
    for t_i in range(1, gt):
        part += jnp.dot(y_ref[t_i], w1_ref[t_i], preferred_element_type=jnp.float32)
    acc_ref[...] += part

    @pl.when(k == pl.num_programs(0) - 1)
    def _():
        h = acc_ref[...] + b1_ref[...]
        h = jnp.maximum(h, NEG_SLOPE * h)
        h = h * s_ref[...] + t_ref[...]        # Dropout(p=0.7) is identity in eval mode
        o_ref[...] = (jnp.dot(h, w2_ref[...], preferred_element_type=jnp.float32)
                      + b2_ref[...]).astype(o_ref.dtype)


# ----------------------------------------------------------------------------
# Pallas wrappers
# ----------------------------------------------------------------------------
def conv_bn_pool(g, w_big, bias_r, scale_r, shift_r):
    """g: (Kr, M) bf16 spatial-tap/bin-padded patch rows, w_big: (R, Kr) bf16
    block-Toeplitz weight.  Returns (R//2, M) bf16, rows = (co, bin_pair)."""
    kr, m = g.shape
    r = w_big.shape[0]
    rh = r // 2
    limit = _vmem_limit()
    tl = _pick_lane_tile(m, kr, r, limit)
    grid = (m // tl,)
    return pl.pallas_call(
        _conv_bn_pool_kernel,
        out_shape=jax.ShapeDtypeStruct((rh, m), jnp.bfloat16),
        grid=grid,
        in_specs=[
            pl.BlockSpec((kr, tl), lambda i: (0, i)),
            pl.BlockSpec((r, kr), lambda i: (0, 0)),
            pl.BlockSpec((r, 1), lambda i: (0, 0)),
            pl.BlockSpec((r, 1), lambda i: (0, 0)),
            pl.BlockSpec((r, 1), lambda i: (0, 0)),
        ],
        out_specs=pl.BlockSpec((rh, tl), lambda i: (0, i)),
        compiler_params=pltpu.CompilerParams(
            dimension_semantics=("parallel",), vmem_limit_bytes=limit),
    )(g, w_big, bias_r, scale_r, shift_r)


def fc_fused(y3, w1p, b1, scale, shift, w2, b2):
    """y3: (G, N, HW) bf16 channel/bin-major features, w1p: (G, HW, 128) matching
    permuted fc1 weight.  Returns fc2(BN(LeakyReLU(fc1(y)))) as (N, out) f32."""
    g_total, n, hw = y3.shape
    h1 = w1p.shape[-1]
    o = w2.shape[1]
    limit = _vmem_limit()
    gsteps = _pick_fc_groups(g_total, n, hw, h1, limit)
    gt = g_total // gsteps
    return pl.pallas_call(
        functools.partial(_fc_fused_kernel, gt=gt),
        out_shape=jax.ShapeDtypeStruct((n, o), jnp.float32),
        grid=(gsteps,),
        in_specs=[
            pl.BlockSpec((gt, n, hw), lambda k: (k, 0, 0)),
            pl.BlockSpec((gt, hw, h1), lambda k: (k, 0, 0)),
            pl.BlockSpec((1, h1), lambda k: (0, 0)),
            pl.BlockSpec((1, h1), lambda k: (0, 0)),
            pl.BlockSpec((1, h1), lambda k: (0, 0)),
            pl.BlockSpec((h1, o), lambda k: (0, 0)),
            pl.BlockSpec((1, o), lambda k: (0, 0)),
        ],
        out_specs=pl.BlockSpec((n, o), lambda k: (0, 0)),
        scratch_shapes=[pltpu.VMEM((n, h1), jnp.float32)],
        compiler_params=pltpu.CompilerParams(
            dimension_semantics=("arbitrary",), vmem_limit_bytes=limit),
    )(y3.astype(jnp.bfloat16), w1p.astype(jnp.bfloat16),
      b1.reshape(1, h1).astype(jnp.float32),
      scale.reshape(1, h1).astype(jnp.float32),
      shift.reshape(1, h1).astype(jnp.float32),
      w2.astype(jnp.float32), b2.reshape(1, o).astype(jnp.float32))


# ----------------------------------------------------------------------------
# Host glue: patch rows / block-Toeplitz weights / BN folding / conv stage
# ----------------------------------------------------------------------------
def bn_affine(gamma, beta, mean, var):
    s = gamma / jnp.sqrt(var + BN_EPS)
    return s, beta - mean * s


def _build_patch_rows(x_cb, kd, kh, pad_hw, pad_b):
    """x_cb: (C_in, B, N, H, W) bf16 (bins before spatial).  Returns
    G (C_in*kd*kh*(B+2*pad_b), N*H*W) bf16: one row block per spatial tap (ci,di,hj)
    with the zero-padded bin axis folded under it (matches the Toeplitz weight)."""
    c_in, b, n, h, w = x_cb.shape
    xp = jnp.pad(x_cb, ((0, 0), (pad_b, pad_b), (0, 0),
                        (pad_hw, pad_hw), (pad_hw, pad_hw)))
    bp = b + 2 * pad_b
    m = n * h * w
    rows = []
    for ci in range(c_in):
        for di in range(kd):
            for hj in range(kh):
                rows.append(xp[ci, :, :, di:di + h, hj:hj + w].reshape(bp, m))
    return jnp.concatenate(rows, axis=0)


def _build_toeplitz_weight(w, b_bins):
    """w: (Cout, Cin, kd, kh, kb).  Returns (Cout*B, Cin*kd*kh*(B+2*pb)) with rows
    ordered [even bins ; odd bins], each half (co, bin_pair) co-major, so the bin
    MaxPool is max(top half, bottom half) in the kernel epilogue."""
    cout, cin, kd, kh, kb = w.shape
    pb = (kb - 1) // 2
    bp = b_bins + 2 * pb
    ks = cin * kd * kh
    w5 = w.reshape(cout, ks, kb)
    tap = jnp.arange(bp)[None, :] - jnp.arange(b_bins)[:, None]    # (B, Bp)
    valid = (tap >= 0) & (tap < kb)
    gathered = w5[:, :, jnp.clip(tap, 0, kb - 1)]                   # (Cout, Ks, B, Bp)
    wfull = jnp.where(valid[None, None], gathered, 0.0)
    wfull = wfull.transpose(0, 2, 1, 3)                             # (Cout, B, Ks, Bp)
    even = wfull[:, 0::2].reshape(cout * (b_bins // 2), ks * bp)
    odd = wfull[:, 1::2].reshape(cout * (b_bins // 2), ks * bp)
    return jnp.concatenate([even, odd], axis=0)


def _row_params(vec, b_bins):
    """Per-(co, bin) row vector for bias / BN scale / BN shift (value depends on co)."""
    half = jnp.repeat(vec, b_bins // 2)
    return jnp.concatenate([half, half]).reshape(-1, 1).astype(jnp.float32)


def conv_stage(x_cb, w, bias, bn_g, bn_b, bn_m, bn_v):
    """x_cb: (C_in, B, N, H, W) bf16.  One fused Conv3d+LeakyReLU+BN3d+MaxPool1d(2)
    stage.  Returns (Cout, B//2, N, H, W) bf16."""
    c_in, b_bins, n, h, w_sp = x_cb.shape
    cout, _, kd, kh, kb = w.shape
    pb = (kb - 1) // 2

    g = _build_patch_rows(x_cb, kd, kh, 1, pb)                      # (Ks*Bp, M)
    wb = _build_toeplitz_weight(w, b_bins).astype(jnp.bfloat16)     # (Cout*B, Ks*Bp)

    # pad the reduction rows to a multiple of 8 (zero rows x zero weight cols)
    kr = g.shape[0]
    krp = ((kr + 7) // 8) * 8
    if krp != kr:
        g = jnp.pad(g, ((0, krp - kr), (0, 0)))
        wb = jnp.pad(wb, ((0, 0), (0, krp - kr)))

    # pad lanes to a multiple of 128 so the tile picker never falls back to a
    # single oversized block
    m = n * h * w_sp
    mp = ((m + 127) // 128) * 128
    if mp != m:
        g = jnp.pad(g, ((0, 0), (0, mp - m)))

    s, t = bn_affine(bn_g, bn_b, bn_m, bn_v)
    y = conv_bn_pool(g, wb, _row_params(bias, b_bins),
                     _row_params(s, b_bins), _row_params(t, b_bins))
    if mp != m:
        y = y[:, :m]
    return y.reshape(cout, b_bins // 2, n, h, w_sp)


# ----------------------------------------------------------------------------
# Parameters
# ----------------------------------------------------------------------------
def init_params(H, W, B, out_dims=2, seed=42):
    C1, C2 = 4, 8
    in_feats = C2 * H * W * (B // 4)
    ks = jax.random.split(jax.random.PRNGKey(seed), 20)

    def n(k, shape, s=0.1):
        return (s * jax.random.normal(k, shape)).astype(jnp.float32)

    p = {}
    p['w1'] = n(ks[0], (C1, 1, 3, 3, 7));          p['b1'] = n(ks[1], (C1,))
    p['bn1_g'] = 1.0 + n(ks[2], (C1,));            p['bn1_b'] = n(ks[3], (C1,))
    p['bn1_m'] = n(ks[4], (C1,));                  p['bn1_v'] = 0.5 + jnp.abs(n(ks[5], (C1,), 1.0))
    p['w2'] = n(ks[6], (C2, C1, 3, 3, 5));         p['b2'] = n(ks[7], (C2,))
    p['bn2_g'] = 1.0 + n(ks[8], (C2,));            p['bn2_b'] = n(ks[9], (C2,))
    p['bn2_m'] = n(ks[10], (C2,));                 p['bn2_v'] = 0.5 + jnp.abs(n(ks[11], (C2,), 1.0))
    p['fc1_w'] = n(ks[12], (in_feats, 128), 0.02); p['fc1_b'] = n(ks[13], (128,))
    p['bn3_g'] = 1.0 + n(ks[14], (128,));          p['bn3_b'] = n(ks[15], (128,))
    p['bn3_m'] = n(ks[16], (128,));                p['bn3_v'] = 0.5 + jnp.abs(n(ks[17], (128,), 1.0))
    p['fc2_w'] = n(ks[18], (128, out_dims), 0.05); p['fc2_b'] = n(ks[19], (out_dims,))
    return p


# ----------------------------------------------------------------------------
# Full forward (eval mode)
# ----------------------------------------------------------------------------
def deep_location8_forward(x, p):
    """x: (N, H, W, B) f32.  Returns (N, out_dims) f32."""
    n, h, w, b = x.shape
    c2 = p['w2'].shape[0]

    # conv path runs bf16 end-to-end (fp32 MXU accumulation inside the kernels)
    x_cb = x.astype(jnp.bfloat16).transpose(3, 0, 1, 2)[None]       # (1, B, N, H, W)

    y1 = conv_stage(x_cb, p['w1'], p['b1'],
                    p['bn1_g'], p['bn1_b'], p['bn1_m'], p['bn1_v'])  # (4, B/2, N, H, W)
    y2 = conv_stage(y1, p['w2'], p['b2'],
                    p['bn2_g'], p['bn2_b'], p['bn2_m'], p['bn2_v'])  # (8, B/4, N, H, W)

    # fc stage consumes y2 in its native (channel, bin)-major layout: no transpose.
    b4 = y2.shape[1]
    hw = h * w
    y3 = y2.reshape(c2 * b4, n, hw)
    w1p = (p['fc1_w'].reshape(c2, h, w, b4, -1)
           .transpose(0, 3, 1, 2, 4)
           .reshape(c2 * b4, hw, -1))                                # (C2*B4, HW, 128)
    s3, t3 = bn_affine(p['bn3_g'], p['bn3_b'], p['bn3_m'], p['bn3_v'])
    return fc_fused(y3, w1p, p['fc1_b'], s3, t3, p['fc2_w'], p['fc2_b'])


# ----------------------------------------------------------------------------
# Pure-JAX reference (for in-script correctness check)
# ----------------------------------------------------------------------------
def reference_forward(x, p, H, W, B):
    N = x.shape[0]
    C1, C2 = 4, 8
    hi = lax.Precision.HIGHEST
    lrelu = lambda v: jnp.where(v >= 0, v, NEG_SLOPE * v)

    def bn5(v, g, b, m, var):
        sh = (1, -1, 1, 1, 1)
        return (v - m.reshape(sh)) / jnp.sqrt(var.reshape(sh) + BN_EPS) * g.reshape(sh) + b.reshape(sh)

    dn = ('NCDHW', 'OIDHW', 'NCDHW')
    y = lax.conv_general_dilated(x[:, None], p['w1'], (1, 1, 1),
                                 ((1, 1), (1, 1), (3, 3)), dimension_numbers=dn, precision=hi)
    y = bn5(lrelu(y + p['b1'].reshape(1, -1, 1, 1, 1)), p['bn1_g'], p['bn1_b'], p['bn1_m'], p['bn1_v'])
    y = y.reshape(N, C1 * H * W, B).reshape(N, C1 * H * W, B // 2, 2).max(-1)
    y = y.reshape(N, C1, H, W, B // 2)

    y = lax.conv_general_dilated(y, p['w2'], (1, 1, 1),
                                 ((1, 1), (1, 1), (2, 2)), dimension_numbers=dn, precision=hi)
    y = bn5(lrelu(y + p['b2'].reshape(1, -1, 1, 1, 1)), p['bn2_g'], p['bn2_b'], p['bn2_m'], p['bn2_v'])
    B2 = B // 2
    y = y.reshape(N, C2 * H * W, B2).reshape(N, C2 * H * W, B2 // 2, 2).max(-1)
    y = y.reshape(N, -1)

    h = lrelu(jnp.matmul(y, p['fc1_w'], precision=hi) + p['fc1_b'])
    h = (h - p['bn3_m']) / jnp.sqrt(p['bn3_v'] + BN_EPS) * p['bn3_g'] + p['bn3_b']
    return jnp.matmul(h, p['fc2_w'], precision=hi) + p['fc2_b']


if __name__ == "__main__":
    # small shapes consistent with the module: 8x8 histogram, num_bins % 4 == 0
    N, H, W, B = 2, 8, 8, 16
    x = jax.random.normal(jax.random.PRNGKey(0), (N, H, W, B), dtype=jnp.float32)
    params = init_params(H, W, B, out_dims=2)

    fwd = jax.jit(deep_location8_forward)
    out = jax.block_until_ready(fwd(x, params))
    assert out.shape == (N, 2)
    assert bool(jnp.all(jnp.isfinite(out)))

    ref = reference_forward(x, params, H, W, B)
    err = float(jnp.max(jnp.abs(out - ref)))
    # conv + fc1 run in bf16 (fp32 MXU accumulation) -> small deviation vs fp32 ref
    assert err < 1e-1, (err, out, ref)
    print("KERNEL_OK")
</pallas_src>

<mosaic_0001>
module attributes {stable_mosaic.version = 11 : i64} {
  func.func @_conv_bn_pool_kernel(%arg0: i32, %arg1: memref<200x128xbf16, #tpu.memory_space<vmem>>, %arg2: memref<64x200xbf16, #tpu.memory_space<vmem>>, %arg3: memref<64x1xf32, #tpu.memory_space<vmem>>, %arg4: memref<64x1xf32, #tpu.memory_space<vmem>>, %arg5: memref<64x1xf32, #tpu.memory_space<vmem>>, %arg6: memref<32x128xbf16, #tpu.memory_space<vmem>>) attributes {dimension_semantics = [#tpu.dimension_semantics<parallel>], iteration_bounds = array<i64: 1>, scalar_prefetch = 0 : i64, scratch_operands = 0 : i64, tpu.core_type = #tpu.core_type<tc>, window_params = [{transform_indices = @transform_0, window_bounds = array<i64: 200, 128>}, {pipeline_mode = #tpu.pipeline_mode<synchronous>, transform_indices = @transform_1, window_bounds = array<i64: 64, 200>}, {pipeline_mode = #tpu.pipeline_mode<synchronous>, transform_indices = @transform_2, window_bounds = array<i64: 64, 1>}, {pipeline_mode = #tpu.pipeline_mode<synchronous>, transform_indices = @transform_3, window_bounds = array<i64: 64, 1>}, {pipeline_mode = #tpu.pipeline_mode<synchronous>, transform_indices = @transform_4, window_bounds = array<i64: 64, 1>}, {transform_indices = @transform_5, window_bounds = array<i64: 32, 128>}]} {
    %c0 = arith.constant 0 : index
    %c0_0 = arith.constant 0 : index
    %0 = vector.load %arg2[%c0, %c0_0] : memref<64x200xbf16, #tpu.memory_space<vmem>>, vector<64x200xbf16>
    %c0_1 = arith.constant 0 : index
    %c0_2 = arith.constant 0 : index
    %1 = vector.load %arg1[%c0_1, %c0_2] : memref<200x128xbf16, #tpu.memory_space<vmem>>, vector<200x128xbf16>
    %cst = arith.constant dense<0.000000e+00> : vector<64x128xf32>
    %2 = tpu.matmul %0, %1, %cst {dimension_numbers = #tpu.dot_dimension_numbers<[1], [0], [0], [1], [0, 0, 1, 1], [], []>} : vector<64x200xbf16>, vector<200x128xbf16>, vector<64x128xf32> -> vector<64x128xf32>
    %c0_3 = arith.constant 0 : index
    %c0_4 = arith.constant 0 : index
    %3 = vector.load %arg3[%c0_3, %c0_4] : memref<64x1xf32, #tpu.memory_space<vmem>>, vector<64x1xf32>
    %4 = vector.broadcast %3 : vector<64x1xf32> to vector<64x128xf32>
    %5 = arith.addf %2, %4 : vector<64x128xf32>
    %cst_5 = arith.constant 0.00999999977 : f32
    %6 = vector.broadcast %cst_5 : f32 to vector<64x128xf32>
    %7 = arith.mulf %6, %5 : vector<64x128xf32>
    %8 = arith.maximumf %5, %7 : vector<64x128xf32>
    %c0_6 = arith.constant 0 : index
    %c0_7 = arith.constant 0 : index
    %9 = vector.load %arg4[%c0_6, %c0_7] : memref<64x1xf32, #tpu.memory_space<vmem>>, vector<64x1xf32>
    %10 = vector.broadcast %9 : vector<64x1xf32> to vector<64x128xf32>
    %11 = arith.mulf %8, %10 : vector<64x128xf32>
    %c0_8 = arith.constant 0 : index
    %c0_9 = arith.constant 0 : index
    %12 = vector.load %arg5[%c0_8, %c0_9] : memref<64x1xf32, #tpu.memory_space<vmem>>, vector<64x1xf32>
    %13 = vector.broadcast %12 : vector<64x1xf32> to vector<64x128xf32>
    %14 = arith.addf %11, %13 : vector<64x128xf32>
    %15 = vector.extract_strided_slice %14 {offsets = [0, 0], sizes = [32, 128], strides = [1, 1]} : vector<64x128xf32> to vector<32x128xf32>
    %16 = vector.extract_strided_slice %14 {offsets = [32, 0], sizes = [32, 128], strides = [1, 1]} : vector<64x128xf32> to vector<32x128xf32>
    %17 = arith.maximumf %15, %16 : vector<32x128xf32>
    %18 = arith.truncf %17 : vector<32x128xf32> to vector<32x128xbf16>
    %c0_10 = arith.constant 0 : index
    %c0_11 = arith.constant 0 : index
    %19 = vector.load %arg6[%c0_10, %c0_11] : memref<32x128xbf16, #tpu.memory_space<vmem>>, vector<32x128xbf16>
    tpu.vector_store %arg6[%c0_10, %c0_11], %18 {strides = array<i32>} : memref<32x128xbf16, #tpu.memory_space<vmem>>, vector<32x128xbf16>,
    return
  }
  func.func @transform_0(%arg0: i32) -> (i32, i32) {
    %c0_i32 = arith.constant 0 : i32
    %c0_i32_0 = arith.constant 0 : i32
    return %c0_i32, %arg0 : i32, i32
  }
  func.func @transform_1(%arg0: i32) -> (i32, i32) {
    %c0_i32 = arith.constant 0 : i32
    %c0_i32_0 = arith.constant 0 : i32
    %c0_i32_1 = arith.constant 0 : i32
    return %c0_i32, %c0_i32_0 : i32, i32
  }
  func.func @transform_2(%arg0: i32) -> (i32, i32) {
    %c0_i32 = arith.constant 0 : i32
    %c0_i32_0 = arith.constant 0 : i32
    %c0_i32_1 = arith.constant 0 : i32
    return %c0_i32, %c0_i32_0 : i32, i32
  }
  func.func @transform_3(%arg0: i32) -> (i32, i32) {
    %c0_i32 = arith.constant 0 : i32
    %c0_i32_0 = arith.constant 0 : i32
    %c0_i32_1 = arith.constant 0 : i32
    return %c0_i32, %c0_i32_0 : i32, i32
  }
  func.func @transform_4(%arg0: i32) -> (i32, i32) {
    %c0_i32 = arith.constant 0 : i32
    %c0_i32_0 = arith.constant 0 : i32
    %c0_i32_1 = arith.constant 0 : i32
    return %c0_i32, %c0_i32_0 : i32, i32
  }
  func.func @transform_5(%arg0: i32) -> (i32, i32) {
    %c0_i32 = arith.constant 0 : i32
    %c0_i32_0 = arith.constant 0 : i32
    return %c0_i32, %arg0 : i32, i32
  }
}

module attributes {stable_mosaic.version = 11 : i64} {
  func.func @_conv_bn_pool_kernel(%arg0: i32, %arg1: memref<432x128xbf16, #tpu.memory_space<vmem>>, %arg2: memref<64x432xbf16, #tpu.memory_space<vmem>>, %arg3: memref<64x1xf32, #tpu.memory_space<vmem>>, %arg4: memref<64x1xf32, #tpu.memory_space<vmem>>, %arg5: memref<64x1xf32, #tpu.memory_space<vmem>>, %arg6: memref<32x128xbf16, #tpu.memory_space<vmem>>) attributes {dimension_semantics = [#tpu.dimension_semantics<parallel>], iteration_bounds = array<i64: 1>, scalar_prefetch = 0 : i64, scratch_operands = 0 : i64, tpu.core_type = #tpu.core_type<tc>, window_params = [{transform_indices = @transform_0, window_bounds = array<i64: 432, 128>}, {pipeline_mode = #tpu.pipeline_mode<synchronous>, transform_indices = @transform_1, window_bounds = array<i64: 64, 432>}, {pipeline_mode = #tpu.pipeline_mode<synchronous>, transform_indices = @transform_2, window_bounds = array<i64: 64, 1>}, {pipeline_mode = #tpu.pipeline_mode<synchronous>, transform_indices = @transform_3, window_bounds = array<i64: 64, 1>}, {pipeline_mode = #tpu.pipeline_mode<synchronous>, transform_indices = @transform_4, window_bounds = array<i64: 64, 1>}, {transform_indices = @transform_5, window_bounds = array<i64: 32, 128>}]} {
    %c0 = arith.constant 0 : index
    %c0_0 = arith.constant 0 : index
    %0 = vector.load %arg2[%c0, %c0_0] : memref<64x432xbf16, #tpu.memory_space<vmem>>, vector<64x432xbf16>
    %c0_1 = arith.constant 0 : index
    %c0_2 = arith.constant 0 : index
    %1 = vector.load %arg1[%c0_1, %c0_2] : memref<432x128xbf16, #tpu.memory_space<vmem>>, vector<432x128xbf16>
    %cst = arith.constant dense<0.000000e+00> : vector<64x128xf32>
    %2 = tpu.matmul %0, %1, %cst {dimension_numbers = #tpu.dot_dimension_numbers<[1], [0], [0], [1], [0, 0, 1, 1], [], []>} : vector<64x432xbf16>, vector<432x128xbf16>, vector<64x128xf32> -> vector<64x128xf32>
    %c0_3 = arith.constant 0 : index
    %c0_4 = arith.constant 0 : index
    %3 = vector.load %arg3[%c0_3, %c0_4] : memref<64x1xf32, #tpu.memory_space<vmem>>, vector<64x1xf32>
    %4 = vector.broadcast %3 : vector<64x1xf32> to vector<64x128xf32>
    %5 = arith.addf %2, %4 : vector<64x128xf32>
    %cst_5 = arith.constant 0.00999999977 : f32
    %6 = vector.broadcast %cst_5 : f32 to vector<64x128xf32>
    %7 = arith.mulf %6, %5 : vector<64x128xf32>
    %8 = arith.maximumf %5, %7 : vector<64x128xf32>
    %c0_6 = arith.constant 0 : index
    %c0_7 = arith.constant 0 : index
    %9 = vector.load %arg4[%c0_6, %c0_7] : memref<64x1xf32, #tpu.memory_space<vmem>>, vector<64x1xf32>
    %10 = vector.broadcast %9 : vector<64x1xf32> to vector<64x128xf32>
    %11 = arith.mulf %8, %10 : vector<64x128xf32>
    %c0_8 = arith.constant 0 : index
    %c0_9 = arith.constant 0 : index
    %12 = vector.load %arg5[%c0_8, %c0_9] : memref<64x1xf32, #tpu.memory_space<vmem>>, vector<64x1xf32>
    %13 = vector.broadcast %12 : vector<64x1xf32> to vector<64x128xf32>
    %14 = arith.addf %11, %13 : vector<64x128xf32>
    %15 = vector.extract_strided_slice %14 {offsets = [0, 0], sizes = [32, 128], strides = [1, 1]} : vector<64x128xf32> to vector<32x128xf32>
    %16 = vector.extract_strided_slice %14 {offsets = [32, 0], sizes = [32, 128], strides = [1, 1]} : vector<64x128xf32> to vector<32x128xf32>
    %17 = arith.maximumf %15, %16 : vector<32x128xf32>
    %18 = arith.truncf %17 : vector<32x128xf32> to vector<32x128xbf16>
    %c0_10 = arith.constant 0 : index
    %c0_11 = arith.constant 0 : index
    %19 = vector.load %arg6[%c0_10, %c0_11] : memref<32x128xbf16, #tpu.memory_space<vmem>>, vector<32x128xbf16>
    tpu.vector_store %arg6[%c0_10, %c0_11], %18 {strides = array<i32>} : memref<32x128xbf16, #tpu.memory_space<vmem>>, vector<32x128xbf16>,
    return
  }
  func.func @transform_0(%arg0: i32) -> (i32, i32) {
    %c0_i32 = arith.constant 0 : i32
    %c0_i32_0 = arith.constant 0 : i32
    return %c0_i32, %arg0 : i32, i32
  }
  func.func @transform_1(%arg0: i32) -> (i32, i32) {
    %c0_i32 = arith.constant 0 : i32
    %c0_i32_0 = arith.constant 0 : i32
    %c0_i32_1 = arith.constant 0 : i32
    return %c0_i32, %c0_i32_0 : i32, i32
  }
  func.func @transform_2(%arg0: i32) -> (i32, i32) {
    %c0_i32 = arith.constant 0 : i32
    %c0_i32_0 = arith.constant 0 : i32
    %c0_i32_1 = arith.constant 0 : i32
    return %c0_i32, %c0_i32_0 : i32, i32
  }
  func.func @transform_3(%arg0: i32) -> (i32, i32) {
    %c0_i32 = arith.constant 0 : i32
    %c0_i32_0 = arith.constant 0 : i32
    %c0_i32_1 = arith.constant 0 : i32
    return %c0_i32, %c0_i32_0 : i32, i32
  }
  func.func @transform_4(%arg0: i32) -> (i32, i32) {
    %c0_i32 = arith.constant 0 : i32
    %c0_i32_0 = arith.constant 0 : i32
    %c0_i32_1 = arith.constant 0 : i32
    return %c0_i32, %c0_i32_0 : i32, i32
  }
  func.func @transform_5(%arg0: i32) -> (i32, i32) {
    %c0_i32 = arith.constant 0 : i32
    %c0_i32_0 = arith.constant 0 : i32
    return %c0_i32, %arg0 : i32, i32
  }
}

module attributes {stable_mosaic.version = 11 : i64} {
  func.func @_fc_fused_kernel(%arg0: i32, %arg1: memref<4x2x64xbf16, #tpu.memory_space<vmem>>, %arg2: memref<4x64x128xbf16, #tpu.memory_space<vmem>>, %arg3: memref<1x128xf32, #tpu.memory_space<vmem>>, %arg4: memref<1x128xf32, #tpu.memory_space<vmem>>, %arg5: memref<1x128xf32, #tpu.memory_space<vmem>>, %arg6: memref<128x2xf32, #tpu.memory_space<vmem>>, %arg7: memref<1x2xf32, #tpu.memory_space<vmem>>, %arg8: memref<2x2xf32, #tpu.memory_space<vmem>>, %arg9: memref<2x128xf32, #tpu.memory_space<vmem>>) attributes {dimension_semantics = [#tpu.dimension_semantics<arbitrary>], iteration_bounds = array<i64: 8>, scalar_prefetch = 0 : i64, scratch_operands = 1 : i64, tpu.core_type = #tpu.core_type<tc>, window_params = [{transform_indices = @transform_0, window_bounds = array<i64: 4, 2, 64>}, {transform_indices = @transform_1, window_bounds = array<i64: 4, 64, 128>}, {pipeline_mode = #tpu.pipeline_mode<synchronous>, transform_indices = @transform_2, window_bounds = array<i64: 1, 128>}, {pipeline_mode = #tpu.pipeline_mode<synchronous>, transform_indices = @transform_3, window_bounds = array<i64: 1, 128>}, {pipeline_mode = #tpu.pipeline_mode<synchronous>, transform_indices = @transform_4, window_bounds = array<i64: 1, 128>}, {pipeline_mode = #tpu.pipeline_mode<synchronous>, transform_indices = @transform_5, window_bounds = array<i64: 128, 2>}, {pipeline_mode = #tpu.pipeline_mode<synchronous>, transform_indices = @transform_6, window_bounds = array<i64: 1, 2>}, {pipeline_mode = #tpu.pipeline_mode<synchronous>, transform_indices = @transform_7, window_bounds = array<i64: 2, 2>}]} {
    %c0_i32 = arith.constant 0 : i32
    %0 = arith.cmpi eq, %arg0, %c0_i32 : i32
    %1 = arith.extui %0 : i1 to i32
    %c0_i32_0 = arith.constant 0 : i32
    %2 = arith.cmpi ne, %1, %c0_i32_0 : i32
    scf.if %2 {
      %cst_29 = arith.constant 0.000000e+00 : f32
      %32 = vector.broadcast %cst_29 : f32 to vector<2x128xf32>
      %c0_30 = arith.constant 0 : index
      %c0_31 = arith.constant 0 : index
      %33 = vector.load %arg9[%c0_30, %c0_31] : memref<2x128xf32, #tpu.memory_space<vmem>>, vector<2x128xf32>
      tpu.vector_store %arg9[%c0_30, %c0_31], %32 {strides = array<i32>} : memref<2x128xf32, #tpu.memory_space<vmem>>, vector<2x128xf32>,
    } else {
    }
    %c0 = arith.constant 0 : index
    %c0_1 = arith.constant 0 : index
    %c0_2 = arith.constant 0 : index
    %3 = vector.load %arg1[%c0, %c0_1, %c0_2] : memref<4x2x64xbf16, #tpu.memory_space<vmem>>, vector<1x2x64xbf16>
    %4 = vector.shape_cast %3 : vector<1x2x64xbf16> to vector<2x64xbf16>
    %c0_3 = arith.constant 0 : index
    %c0_4 = arith.constant 0 : index
    %c0_5 = arith.constant 0 : index
    %5 = vector.load %arg2[%c0_3, %c0_4, %c0_5] : memref<4x64x128xbf16, #tpu.memory_space<vmem>>, vector<1x64x128xbf16>
    %6 = vector.shape_cast %5 : vector<1x64x128xbf16> to vector<64x128xbf16>
    %cst = arith.constant dense<0.000000e+00> : vector<2x128xf32>
    %7 = tpu.matmul %4, %6, %cst {dimension_numbers = #tpu.dot_dimension_numbers<[1], [0], [0], [1], [0, 0, 1, 1], [], []>} : vector<2x64xbf16>, vector<64x128xbf16>, vector<2x128xf32> -> vector<2x128xf32>
    %c1 = arith.constant 1 : index
    %c0_6 = arith.constant 0 : index
    %c0_7 = arith.constant 0 : index
    %8 = vector.load %arg1[%c1, %c0_6, %c0_7] : memref<4x2x64xbf16, #tpu.memory_space<vmem>>, vector<1x2x64xbf16>
    %9 = vector.shape_cast %8 : vector<1x2x64xbf16> to vector<2x64xbf16>
    %c1_8 = arith.constant 1 : index
    %c0_9 = arith.constant 0 : index
    %c0_10 = arith.constant 0 : index
    %10 = vector.load %arg2[%c1_8, %c0_9, %c0_10] : memref<4x64x128xbf16, #tpu.memory_space<vmem>>, vector<1x64x128xbf16>
    %11 = vector.shape_cast %10 : vector<1x64x128xbf16> to vector<64x128xbf16>
    %cst_11 = arith.constant dense<0.000000e+00> : vector<2x128xf32>
    %12 = tpu.matmul %9, %11, %cst_11 {dimension_numbers = #tpu.dot_dimension_numbers<[1], [0], [0], [1], [0, 0, 1, 1], [], []>} : vector<2x64xbf16>, vector<64x128xbf16>, vector<2x128xf32> -> vector<2x128xf32>
    %13 = arith.addf %7, %12 : vector<2x128xf32>
    %c2 = arith.constant 2 : index
    %c0_12 = arith.constant 0 : index
    %c0_13 = arith.constant 0 : index
    %14 = vector.load %arg1[%c2, %c0_12, %c0_13] : memref<4x2x64xbf16, #tpu.memory_space<vmem>>, vector<1x2x64xbf16>
    %15 = vector.shape_cast %14 : vector<1x2x64xbf16> to vector<2x64xbf16>
    %c2_14 = arith.constant 2 : index
    %c0_15 = arith.constant 0 : index
    %c0_16 = arith.constant 0 : index
    %16 = vector.load %arg2[%c2_14, %c0_15, %c0_16] : memref<4x64x128xbf16, #tpu.memory_space<vmem>>, vector<1x64x128xbf16>
    %17 = vector.shape_cast %16 : vector<1x64x128xbf16> to vector<64x128xbf16>
    %cst_17 = arith.constant dense<0.000000e+00> : vector<2x128xf32>
    %18 = tpu.matmul %15, %17, %cst_17 {dimension_numbers = #tpu.dot_dimension_numbers<[1], [0], [0], [1], [0, 0, 1, 1], [], []>} : vector<2x64xbf16>, vector<64x128xbf16>, vector<2x128xf32> -> vector<2x128xf32>
    %19 = arith.addf %13, %18 : vector<2x128xf32>
    %c3 = arith.constant 3 : index
    %c0_18 = arith.constant 0 : index
    %c0_19 = arith.constant 0 : index
    %20 = vector.load %arg1[%c3, %c0_18, %c0_19] : memref<4x2x64xbf16, #tpu.memory_space<vmem>>, vector<1x2x64xbf16>
    %21 = vector.shape_cast %20 : vector<1x2x64xbf16> to vector<2x64xbf16>
    %c3_20 = arith.constant 3 : index
    %c0_21 = arith.constant 0 : index
    %c0_22 = arith.constant 0 : index
    %22 = vector.load %arg2[%c3_20, %c0_21, %c0_22] : memref<4x64x128xbf16, #tpu.memory_space<vmem>>, vector<1x64x128xbf16>
    %23 = vector.shape_cast %22 : vector<1x64x128xbf16> to vector<64x128xbf16>
    %cst_23 = arith.constant dense<0.000000e+00> : vector<2x128xf32>
    %24 = tpu.matmul %21, %23, %cst_23 {dimension_numbers = #tpu.dot_dimension_numbers<[1], [0], [0], [1], [0, 0, 1, 1], [], []>} : vector<2x64xbf16>, vector<64x128xbf16>, vector<2x128xf32> -> vector<2x128xf32>
    %25 = arith.addf %19, %24 : vector<2x128xf32>
    %c0_24 = arith.constant 0 : index
    %c0_25 = arith.constant 0 : index
    %26 = vector.load %arg9[%c0_24, %c0_25] : memref<2x128xf32, #tpu.memory_space<vmem>>, vector<2x128xf32>
    %27 = arith.addf %26, %25 : vector<2x128xf32>
    %c0_26 = arith.constant 0 : index
    %c0_27 = arith.constant 0 : index
    %28 = vector.load %arg9[%c0_26, %c0_27] : memref<2x128xf32, #tpu.memory_space<vmem>>, vector<2x128xf32>
    tpu.vector_store %arg9[%c0_26, %c0_27], %27 {strides = array<i32>} : memref<2x128xf32, #tpu.memory_space<vmem>>, vector<2x128xf32>,
    %c7_i32 = arith.constant 7 : i32
    %29 = arith.cmpi eq, %arg0, %c7_i32 : i32
    %30 = arith.extui %29 : i1 to i32
    %c0_i32_28 = arith.constant 0 : i32
    %31 = arith.cmpi ne, %30, %c0_i32_28 : i32
    scf.if %31 {
      %c0_29 = arith.constant 0 : index
      %c0_30 = arith.constant 0 : index
      %32 = vector.load %arg9[%c0_29, %c0_30] : memref<2x128xf32, #tpu.memory_space<vmem>>, vector<2x128xf32>
      %c0_31 = arith.constant 0 : index
      %c0_32 = arith.constant 0 : index
      %33 = vector.load %arg3[%c0_31, %c0_32] : memref<1x128xf32, #tpu.memory_space<vmem>>, vector<1x128xf32>
      %34 = vector.broadcast %33 : vector<1x128xf32> to vector<2x128xf32>
      %35 = arith.addf %32, %34 : vector<2x128xf32>
      %cst_33 = arith.constant 0.00999999977 : f32
      %36 = vector.broadcast %cst_33 : f32 to vector<2x128xf32>
      %37 = arith.mulf %36, %35 : vector<2x128xf32>
      %38 = arith.maximumf %35, %37 : vector<2x128xf32>
      %c0_34 = arith.constant 0 : index
      %c0_35 = arith.constant 0 : index
      %39 = vector.load %arg4[%c0_34, %c0_35] : memref<1x128xf32, #tpu.memory_space<vmem>>, vector<1x128xf32>
      %40 = vector.broadcast %39 : vector<1x128xf32> to vector<2x128xf32>
      %41 = arith.mulf %38, %40 : vector<2x128xf32>
      %c0_36 = arith.constant 0 : index
      %c0_37 = arith.constant 0 : index
      %42 = vector.load %arg5[%c0_36, %c0_37] : memref<1x128xf32, #tpu.memory_space<vmem>>, vector<1x128xf32>
      %43 = vector.broadcast %42 : vector<1x128xf32> to vector<2x128xf32>
      %44 = arith.addf %41, %43 : vector<2x128xf32>
      %c0_38 = arith.constant 0 : index
      %c0_39 = arith.constant 0 : index
      %45 = vector.load %arg6[%c0_38, %c0_39] : memref<128x2xf32, #tpu.memory_space<vmem>>, vector<128x2xf32>
      %cst_40 = arith.constant dense<0.000000e+00> : vector<2x2xf32>
      %46 = tpu.matmul %44, %45, %cst_40 {dimension_numbers = #tpu.dot_dimension_numbers<[1], [0], [0], [1], [0, 0, 1, 1], [], []>} : vector<2x128xf32>, vector<128x2xf32>, vector<2x2xf32> -> vector<2x2xf32>
      %c0_41 = arith.constant 0 : index
      %c0_42 = arith.constant 0 : index
      %47 = vector.load %arg7[%c0_41, %c0_42] : memref<1x2xf32, #tpu.memory_space<vmem>>, vector<1x2xf32>
      %48 = vector.broadcast %47 : vector<1x2xf32> to vector<2x2xf32>
      %49 = arith.addf %46, %48 : vector<2x2xf32>
      %c0_43 = arith.constant 0 : index
      %c0_44 = arith.constant 0 : index
      %50 = vector.load %arg8[%c0_43, %c0_44] : memref<2x2xf32, #tpu.memory_space<vmem>>, vector<2x2xf32>
      tpu.vector_store %arg8[%c0_43, %c0_44], %49 {strides = array<i32>} : memref<2x2xf32, #tpu.memory_space<vmem>>, vector<2x2xf32>,
    } else {
    }
    return
  }
  func.func @transform_0(%arg0: i32) -> (i32, i32, i32) {
    %c0_i32 = arith.constant 0 : i32
    %c0_i32_0 = arith.constant 0 : i32
    %c0_i32_1 = arith.constant 0 : i32
    return %arg0, %c0_i32, %c0_i32_0 : i32, i32, i32
  }
  func.func @transform_1(%arg0: i32) -> (i32, i32, i32) {
    %c0_i32 = arith.constant 0 : i32
    %c0_i32_0 = arith.constant 0 : i32
    %c0_i32_1 = arith.constant 0 : i32
    return %arg0, %c0_i32, %c0_i32_0 : i32, i32, i32
  }
  func.func @transform_2(%arg0: i32) -> (i32, i32) {
    %c0_i32 = arith.constant 0 : i32
    %c0_i32_0 = arith.constant 0 : i32
    %c0_i32_1 = arith.constant 0 : i32
    return %c0_i32, %c0_i32_0 : i32, i32
  }
  func.func @transform_3(%arg0: i32) -> (i32, i32) {
    %c0_i32 = arith.constant 0 : i32
    %c0_i32_0 = arith.constant 0 : i32
    %c0_i32_1 = arith.constant 0 : i32
    return %c0_i32, %c0_i32_0 : i32, i32
  }
  func.func @transform_4(%arg0: i32) -> (i32, i32) {
    %c0_i32 = arith.constant 0 : i32
    %c0_i32_0 = arith.constant 0 : i32
    %c0_i32_1 = arith.constant 0 : i32
    return %c0_i32, %c0_i32_0 : i32, i32
  }
  func.func @transform_5(%arg0: i32) -> (i32, i32) {
    %c0_i32 = arith.constant 0 : i32
    %c0_i32_0 = arith.constant 0 : i32
    %c0_i32_1 = arith.constant 0 : i32
    return %c0_i32, %c0_i32_0 : i32, i32
  }
  func.func @transform_6(%arg0: i32) -> (i32, i32) {
    %c0_i32 = arith.constant 0 : i32
    %c0_i32_0 = arith.constant 0 : i32
    %c0_i32_1 = arith.constant 0 : i32
    return %c0_i32, %c0_i32_0 : i32, i32
  }
  func.func @transform_7(%arg0: i32) -> (i32, i32) {
    %c0_i32 = arith.constant 0 : i32
    %c0_i32_0 = arith.constant 0 : i32
    %c0_i32_1 = arith.constant 0 : i32
    return %c0_i32, %c0_i32_0 : i32, i32
  }
}

</mosaic_0001>

<bundles_post_ra>
// kernel: deep_location8_forward.3
= control target key start
LH: loop header
LB: loop body
LE: loop exit
PB: predicated region body
PF: predicated region fallthrough
CT: control target
= control target key end

     0   :  { %v564_v0 = vmov 0   ;;  %vm226_vm0 = vcmask 1043456   ;;  %vm213_vm1 = vcmask 588800   ;;  %s779_s2 = inlined_call_operand.vmem [shape: f32[64,1], index: 2, kind: input, shape index: {}]   ;;  %s780_s0 = inlined_call_operand.vmem [shape: bf16[200,128], index: 0, kind: input, shape index: {}]   ;;  %s781_s3 = inlined_call_operand.vmem [shape: f32[64,1], index: 3, kind: input, shape index: {}]   ;;  %s782_s1 = inlined_call_operand.vmem [shape: bf16[64,200], index: 1, kind: input, shape index: {}]   ;;  %s783_s4 = inlined_call_operand.vmem [shape: f32[64,1], index: 4, kind: input, shape index: {}]   ;;  %s784_s5 = inlined_call_operand.vmem [shape: bf16[32,128], index: 5, kind: output, shape index: {}]  }
   0x1   :  { %562 = vset.pattern.permute.xlu1 %v564_v0  ;;  %561 = vset.pattern.permute.xlu0 %v564_v0  ;;  %v56_v1 = vld [vmem:[%s779_s2 + $0x10] sm:$0xff]  ;;  %v54_v2 = vld [vmem:[%s779_s2] sm:$0xff]  ;;  %v531_v4 = vld [vmem:[%s780_s0 + $0x38] sm:$0xff] }
   0x2   :  { %v58_v3 = vld [vmem:[%s779_s2 + $0x20] sm:$0xff]  ;;  %563 = vset.pattern.permute.xlu2 %v564_v0  ;;  %74 = vperm.xlu1 %562, %v56_v1   ;;  %v530_v7 = vld [vmem:[%s780_s0 + $0x30] sm:$0xff]  ;;  %v57_v10 = vld [vmem:[%s779_s2 + $0x18] sm:$0xff] }
   0x3   :  { %v53_v5 = vld [vmem:[%s780_s0 + $0x60] sm:$0xf]  ;;  %64 = vperm.xlu0 %561, %v54_v2   ;;  %84 = vperm.xlu2 %563, %v58_v3   ;;  %v55_v11 = vld [vmem:[%s779_s2 + $0x8] sm:$0xff]  ;;  %v535_v13 = vld [vmem:[%s780_s0 + $0x58] sm:$0xff] }
   0x4   :  { %v187_v6 = vunpack.c.l.b16 %v53_v5  ;;  %230 = vmatpush.bf16.msra.mxu0 %v531_v4  ;;  %547 = vmatpush.bf16.msra.mxu2 %v531_v4  ;;  %v59_v12 = vld [vmem:[%s779_s2 + $0x28] sm:$0xff]  ;;  %v534_v15 = vld [vmem:[%s780_s0 + $0x50] sm:$0xff]  ;;  %v528_v16 = vld [vmem:[%s780_s0 + $0x20] sm:$0xff] }
   0x5   :  { %v529_v14 = vld [vmem:[%s780_s0 + $0x28] sm:$0xff]  ;;  %v61_v17 = vld [vmem:[%s779_s2 + $0x38] sm:$0xff]  ;;  %v60_v18 = vld [vmem:[%s779_s2 + $0x30] sm:$0xff] }
   0x6   :  { %v200_v8 = vpack.c.b16 %v187_v6, %v187_v6  ;;  %v304_v19 = vld [vmem:[%s781_s3] sm:$0xff]  ;;  %v533_v20 = vld [vmem:[%s780_s0 + $0x48] sm:$0xff]  ;;  %v527_v21 = vld [vmem:[%s780_s0 + $0x18] sm:$0xff] }
   0x7   :  { %v532_v22 = vld [vmem:[%s780_s0 + $0x40] sm:$0xff]  ;;  %v526_v23 = vld [vmem:[%s780_s0 + $0x10] sm:$0xff]  ;;  %v444_v25 = vld [vmem:[%s782_s1 + $0x18] sm:$0xf0] }
   0x8   :  { %v228_v9 = vsel %vm226_vm0, %v200_v8, 0  ;;  %231 = vmatpush.bf16.msra.mxu0 %v530_v7  ;;  %548 = vmatpush.bf16.msra.mxu2 %v530_v7  ;;  %v518_v24 = vld [vmem:[%s782_s1 + $0x14] sm:$0xf]  ;;  %v516_v26 = vld [vmem:[%s782_s1 + $0x4] sm:$0xf]  ;;  %v305_v30 = vld [vmem:[%s781_s3 + $0x8] sm:$0xff] }
   0x9   :  { %555 = vmatpush.bf16.msra.mxu3 %v228_v9  ;;  %262 = vmatpush.bf16.msra.mxu1 %v228_v9  ;;  %v436_v27 = vld [vmem:[%s782_s1 + $0x8] sm:$0xf0]  ;;  %v306_v28 = vld [vmem:[%s781_s3 + $0x10] sm:$0xff]  ;;  %v447_v29 = vor.u32 %v518_v24, %v444_v25  ;;  %v307_v32 = vld [vmem:[%s781_s3 + $0x18] sm:$0xff] }
   0xa   :  { %79 = vperm.xlu1 %562, %v57_v10   ;;  %v525_v31 = vld [vmem:[%s780_s0 + $0x8] sm:$0xff]  ;;  %v439_v33 = vor.u32 %v516_v26, %v436_v27  ;;  %v524_v34 = vld [vmem:[%s780_s0] sm:$0xff]  ;;  %v310_v43 = vld [vmem:[%s781_s3 + $0x30] sm:$0xff] }
   0xb   :  { %69 = vperm.xlu0 %561, %v55_v11   ;;  %89 = vperm.xlu2 %563, %v59_v12   ;;  %v434_v35 = vld [vmem:[%s782_s1] sm:$0xf]  ;;  %v517_v36 = vld [vmem:[%s782_s1 + $0x4] sm:$0xf0]  ;;  %v520_v44 = vld [vmem:[%s782_s1 + $0x24] sm:$0xf] }
   0xc   :  { %232 = vmatpush.bf16.msra.mxu0 %v529_v14  ;;  %549 = vmatpush.bf16.msra.mxu2 %v529_v14  ;;  %v450_v37 = vld [vmem:[%s782_s1 + $0x20] sm:$0xf]  ;;  %v521_v38 = vld [vmem:[%s782_s1 + $0x24] sm:$0xf0]  ;;  %v435_v40 = vor.u32 %v517_v36, %v434_v35  ;;  %v452_v45 = vld [vmem:[%s782_s1 + $0x28] sm:$0xf0] }
   0xd   :  { %556 = vmatpush.bf16.msra.mxu3 %v535_v13  ;;  %263 = vmatpush.bf16.msra.mxu1 %v535_v13  ;;  %v309_v39 = vld [vmem:[%s781_s3 + $0x28] sm:$0xff]  ;;  %v308_v41 = vld [vmem:[%s781_s3 + $0x20] sm:$0xff]  ;;  %v451_v42 = vor.u32 %v521_v38, %v450_v37  ;;  %v455_v47 = vor.u32 %v520_v44, %v452_v45  ;;  %v311_v48 = vld [vmem:[%s781_s3 + $0x38] sm:$0xff] }
   0xe   :  { %v360_v46 = vld [vmem:[%s783_s4] sm:$0xff]  ;;  %v361_v49 = vld [vmem:[%s783_s4 + $0x8] sm:$0xff]  ;;  %v442_v50 = vld [vmem:[%s782_s1 + $0x10] sm:$0xf] }
   0xf   :  { %v519_v51 = vld [vmem:[%s782_s1 + $0x14] sm:$0xf0]  ;;  %v458_v52 = vld [vmem:[%s782_s1 + $0x30] sm:$0xf]  ;;  %v364_v58 = vld [vmem:[%s783_s4 + $0x20] sm:$0xff] }
  0x10   :  { %233 = vmatpush.bf16.msra.mxu0 %v528_v16  ;;  %550 = vmatpush.bf16.msra.mxu2 %v528_v16  ;;  %v523_v53 = vld [vmem:[%s782_s1 + $0x34] sm:$0xf0]  ;;  %v443_v55 = vor.u32 %v519_v51, %v442_v50  ;;  %v362_v56 = vld [vmem:[%s783_s4 + $0x10] sm:$0xff]  ;;  %v460_v60 = vld [vmem:[%s782_s1 + $0x38] sm:$0xf0] }
  0x11   :  { %557 = vmatpush.bf16.msra.mxu3 %v534_v15  ;;  %264 = vmatpush.bf16.msra.mxu1 %v534_v15  ;;  %v363_v54 = vld [vmem:[%s783_s4 + $0x18] sm:$0xff]  ;;  %v459_v57 = vor.u32 %v523_v53, %v458_v52  ;;  %v522_v59 = vld [vmem:[%s782_s1 + $0x34] sm:$0xf]  ;;  %v365_v63 = vld [vmem:[%s783_s4 + $0x28] sm:$0xff] }
  0x12   :  { %99 = vperm.xlu1 %562, %v61_v17   ;;  %v366_v61 = vld [vmem:[%s783_s4 + $0x30] sm:$0xff]  ;;  %v463_v62 = vor.u32 %v522_v59, %v460_v60  ;;  %v367_v0 = vld [vmem:[%s783_s4 + $0x38] sm:$0xff] }
  0x13   :  { %94 = vperm.xlu0 %561, %v60_v18   ;;  %314 = vperm.xlu2 %563, %v304_v19  }
  0x14   :  { %234 = vmatpush.bf16.msra.mxu0 %v527_v21  ;;  %551 = vmatpush.bf16.msra.mxu2 %v527_v21 }
  0x15   :  { %558 = vmatpush.bf16.msra.mxu3 %v533_v20  ;;  %265 = vmatpush.bf16.msra.mxu1 %v533_v20 }
  0x18   :  { %235 = vmatpush.bf16.msra.mxu0 %v526_v23  ;;  %552 = vmatpush.bf16.msra.mxu2 %v526_v23 }
  0x19   :  { %559 = vmatpush.bf16.msra.mxu3 %v532_v22  ;;  %266 = vmatpush.bf16.msra.mxu1 %v532_v22 }
  0x1a   :  { %324 = vperm.xlu1 %562, %v306_v28  }
  0x1b   :  { %319 = vperm.xlu0 %561, %v305_v30   ;;  %329 = vperm.xlu2 %563, %v307_v32  }
  0x1c   :  { %513 = vmatmul.msk.bf16.vlgmr.msra.gmra.mxu3 %vm213_vm1, %v447_v29  ;;  %236 = vmatpush.bf16.msra.mxu0 %v525_v31 }
  0x1d   :  { %553 = vmatpush.bf16.msra.mxu2 %v525_v31  ;;  %512 = vmatmul.msk.bf16.vlgmr.msra.gmra.mxu1 %vm213_vm1, %v439_v33 }
  0x20   :  { %237 = vmatpush.bf16.msra.mxu0 %v524_v34 }
  0x21   :  { %554 = vmatpush.bf16.msra.mxu2 %v524_v34 }
  0x22   :  { %339 = vperm.xlu1 %562, %v309_v39  }
  0x23   :  { %334 = vperm.xlu0 %561, %v308_v41   ;;  %238 = vmatmul.bf16.vlgmr.msra.gmra.mxu0 %v435_v40 }
  0x24   :  { %344 = vperm.xlu2 %563, %v310_v43   ;;  %248 = vmatmul.bf16.vlgmr.msra.gmra.mxu2 %v451_v42 }
  0x2a   :  { %370 = vperm.xlu1 %562, %v360_v46  }
  0x2b   :  { %349 = vperm.xlu0 %561, %v311_v48  }
  0x2c   :  { %514 = vmatmul.msk.bf16.gmra.mxu3 %vm213_vm1, %v455_v47  ;;  %375 = vperm.xlu2 %563, %v361_v49  }
  0x32   :  { %385 = vperm.xlu1 %562, %v363_v54  }
  0x33   :  { %380 = vperm.xlu0 %561, %v362_v56   ;;  %243 = vmatmul.bf16.gmra.mxu0 %v443_v55 }
  0x34   :  { %390 = vperm.xlu2 %563, %v364_v58   ;;  %253 = vmatmul.bf16.gmra.mxu2 %v459_v57 }
  0x3a   :  { %400 = vperm.xlu1 %562, %v366_v61  }
  0x3b   :  { %395 = vperm.xlu0 %561, %v365_v63  }
  0x3c   :  { %515 = vmatmul.msk.bf16.gmra.mxu3 %vm213_vm1, %v463_v62  ;;  %405 = vperm.xlu2 %563, %v367_v0  }
  0x5d   :  { %v85_v2 = vpop.permute.xlu2 %84 }
  0x65   :  { %v90_v5 = vpop.permute.xlu2 %89 }
  0x6d   :  { %v315_v8 = vpop.permute.xlu2 %314 }
  0x74   :  { %v75_v4 = vpop.permute.xlu1 %74 }
  0x75   :  { %v65_v1 = vpop.permute.xlu0 %64  ;;  %v760_v11 = vpop.permute.xlu2 %329 }
  0x7c   :  { %v80_v7 = vpop.permute.xlu1 %79 }
  0x7d   :  { %v70_v3 = vpop.permute.xlu0 %69 }
  0x7e   :  { %v764_v19 = vpop.permute.xlu2 %344 }
  0x84   :  { %v758_v10 = vpop.permute.xlu1 %99 }
  0x85   :  { %v95_v6 = vpop.permute.xlu0 %94 }
  0x86   :  { %v376_v34 = vpop.permute.xlu2 %375 }
  0x8c   :  { %v762_v16 = vpop.permute.xlu1 %324 }
  0x8d   :  { %v320_v9 = vpop.permute.xlu0 %319 }
  0x8e   :  { %v391_v54 = vpop.permute.xlu2 %390 }
  0x94   :  { %v340_v25 = vpop.permute.xlu1 %339 }
  0x95   :  { %v335_v13 = vpop.permute.xlu0 %334 }
  0x9a   :  { %v268_v15 = vpop.f32.mrf.mxu1 }
  0x9c   :  { %v371_v43 = vpop.permute.xlu1 %370 }
  0x9d   :  { %v766_v21 = vpop.permute.xlu0 %349 }
  0x9f   :  { %v273_v12 = vpop.f32.mrf.mxu3 }
  0xa0   :  { %v239_v14 = vpop.f32.mrf.mxu0 }
  0xa1   :  { %v240_v22 = vadd.f32 %v239_v14, %v65_v1 }
  0xa2   :  { %v270_v24 = vpop.f32.mrf.mxu1 }
  0xa3   :  { %v269_v27 = vadd.f32 %v268_v15, %v240_v22 }
  0xa5   :  { %v288_v35 = vmul.f32 0.01, %v269_v27  ;;  %v381_v37 = vpop.permute.xlu0 %380 }
  0xa7   :  { %v275_v17 = vpop.f32.mrf.mxu3  ;;  %v249_v18 = vpop.f32.mrf.mxu2  ;;  %v296_v40 = vmax.f32 %v269_v27, %v288_v35 }
  0xa8   :  { %v241_v20 = vpop.f32.mrf.mxu0  ;;  %v250_v26 = vadd.f32 %v249_v18, %v85_v2 }
  0xa9   :  { %v242_v23 = vadd.f32 %v241_v20, %v70_v3  ;;  %v352_v49 = vmul.f32 %v315_v8, %v296_v40  ;;  %v386_v8 = vpop.permute.xlu1 %385 }
  0xab   :  { %v271_v28 = vadd.f32 %v270_v24, %v242_v23  ;;  %v408_v58 = vadd.f32 %v371_v43, %v352_v49 }
  0xad   :  { %v289_v36 = vmul.f32 0.01, %v271_v28  ;;  %v396_v60 = vpop.permute.xlu0 %395 }
  0xaf   :  { %v278_v29 = vpop.f32.mrf.mxu3  ;;  %v251_v31 = vpop.f32.mrf.mxu2  ;;  %v297_v41 = vmax.f32 %v271_v28, %v289_v36 }
  0xb0   :  { %v279_v30 = vadd.f32 %v278_v29, %v250_v26  ;;  %v244_v32 = vpop.f32.mrf.mxu0  ;;  %v252_v39 = vadd.f32 %v251_v31, %v90_v5  ;;  %v406_v29 = vpop.permute.xlu2 %405 }
  0xb1   :  { %v353_v50 = vmul.f32 %v320_v9, %v297_v41  ;;  %v245_v51 = vadd.f32 %v244_v32, %v75_v4  ;;  %v401_v26 = vpop.permute.xlu1 %400 }
  0xb2   :  { %v292_v33 = vmul.f32 0.01, %v279_v30 }
  0xb3   :  { %v409_v59 = vadd.f32 %v376_v34, %v353_v50  ;;  %v274_v62 = vadd.f32 %v273_v12, %v245_v51 }
  0xb4   :  { %v300_v38 = vmax.f32 %v279_v30, %v292_v33 }
  0xb5   :  { %v290_v4 = vmul.f32 0.01, %v274_v62 }
  0xb6   :  { %v356_v47 = vmul.f32 %v335_v13, %v300_v38 }
  0xb7   :  { %v280_v42 = vpop.f32.mrf.mxu3  ;;  %v254_v45 = vpop.f32.mrf.mxu2  ;;  %v298_v12 = vmax.f32 %v274_v62, %v290_v4 }
  0xb8   :  { %v281_v44 = vadd.f32 %v280_v42, %v252_v39  ;;  %v246_v46 = vpop.f32.mrf.mxu0  ;;  %v412_v55 = vadd.f32 %v391_v54, %v356_v47  ;;  %v255_v57 = vadd.f32 %v254_v45, %v95_v6 }
  0xb9   :  { %v247_v53 = vadd.f32 %v246_v46, %v80_v7  ;;  %v354_v23 = vmul.f32 %v762_v16, %v298_v12 }
  0xba   :  { %v293_v48 = vmul.f32 0.01, %v281_v44  ;;  %v416_v2 = vmax.f32 %v408_v58, %v412_v55 }
  0xbb   :  { %v276_v0 = vadd.f32 %v275_v17, %v247_v53  ;;  %v410_v30 = vadd.f32 %v381_v37, %v354_v23 }
  0xbc   :  { %v301_v52 = vmax.f32 %v281_v44, %v293_v48 }
  0xbd   :  { %v291_v7 = vmul.f32 0.01, %v276_v0 }
  0xbe   :  { %v357_v56 = vmul.f32 %v340_v25, %v301_v52 }
  0xbf   :  { %v283_v61 = vpop.f32.mrf.mxu3  ;;  %v256_v9 = vpop.f32.mrf.mxu2  ;;  %v299_v18 = vmax.f32 %v276_v0, %v291_v7 }
  0xc0   :  { %v413_v63 = vadd.f32 %v396_v60, %v357_v56  ;;  %v284_v1 = vadd.f32 %v283_v61, %v255_v57  ;;  %v257_v14 = vadd.f32 %v256_v9, %v758_v10 }
  0xc1   :  { %v355_v24 = vmul.f32 %v760_v11, %v299_v18 }
  0xc2   :  { %v417_v3 = vmax.f32 %v409_v59, %v413_v63  ;;  %v294_v5 = vmul.f32 0.01, %v284_v1 }
  0xc3   :  { %v411_v31 = vadd.f32 %v386_v8, %v355_v24 }
  0xc4   :  { %v539_v13 = vpack.c.bf16 %v417_v3, %v416_v2  ;;  %v302_v6 = vmax.f32 %v284_v1, %v294_v5 }
  0xc6   :  { %540 = vst [vmem:[%s784_s5] sm:$0xff] %v539_v13   ;;  %v358_v20 = vmul.f32 %v764_v19, %v302_v6 }
  0xc7   :  { %v285_v15 = vpop.f32.mrf.mxu3 }
  0xc8   :  { %v286_v17 = vadd.f32 %v285_v15, %v257_v14  ;;  %v414_v27 = vadd.f32 %v401_v26, %v358_v20 }
  0xca   :  { %v295_v22 = vmul.f32 0.01, %v286_v17  ;;  %v418_v32 = vmax.f32 %v410_v30, %v414_v27 }
  0xcc   :  { %v303_v25 = vmax.f32 %v286_v17, %v295_v22 }
  0xce   :  { %v359_v28 = vmul.f32 %v766_v21, %v303_v25 }
  0xd0   :  { %v415_v10 = vadd.f32 %v406_v29, %v359_v28 }
  0xd2   :  { %v419_v33 = vmax.f32 %v411_v31, %v415_v10 }
  0xd4   :  { %v544_v34 = vpack.c.bf16 %v419_v33, %v418_v32 }
  0xd6   :  { %546 = vst [vmem:[%s784_s5 + $0x8] sm:$0xff] %v544_v34  }

// kernel: squeeze.55
= control target key start
LH: loop header
LB: loop body
LE: loop exit
PB: predicated region body
PF: predicated region fallthrough
CT: control target
= control target key end

     0   :  { %s415_s30 = smov 12  ;;  %s447_s2 = smov 3  ;;  %vm366_vm0 = vcmask 1043458   ;;  %vm370_vm1 = vcmask 1045508   ;;  %vm374_vm2 = vcmask 1047558   ;;  %vm376_vm3 = vcmask 64512   ;;  %s1219_s0 = inlined_call_operand.vmem [shape: bf16[1,12,2,8,8], index: 0, kind: input, shape index: {}]   ;;  %s1220_s1 = inlined_call_operand.vmem [shape: bf16[12,128], index: 1, kind: output, shape index: {}]  }
   0x1   :  { %v1059_v0 = vld [vmem:[%s1219_s0 + $0x58] sm:$0xff]   ;;  %v1064_v1 = vld [vmem:[%s1219_s0 + $0x50] sm:$0xff]   ;;  %v1069_v2 = vld [vmem:[%s1219_s0 + $0x48] sm:$0xff]   ;;  %s450_s3 = smov 12  ;;  %s482_s4 = smov 3  ;;  %vm409_vm4 = vcmask 1048512  }
   0x2   :  { %v955_v3 = vunpack.c.h.bf16 %v1059_v0  ;;  %v959_v4 = vunpack.c.h.bf16 %v1064_v1  ;;  %v963_v5 = vunpack.c.h.bf16 %v1069_v2  ;;  %v1077_v6 = vld [vmem:[%s1219_s0 + $0x40] sm:$0xff]   ;;  %v1009_v7 = vld [vmem:[%s1219_s0 + $0x38] sm:$0xff]   ;;  %v1010_v8 = vld [vmem:[%s1219_s0 + $0x30] sm:$0xff]   ;;  %s485_s5 = smov 12  ;;  %s1031_s6 = smov 120   ;;  %v954_v0 = vunpack.c.l.bf16 %v1059_v0 }
   0x3   :  { %v967_v9 = vunpack.c.h.bf16 %v1077_v6  ;;  %v1089_v10 = vld [vmem:[%s1219_s0 + $0x28] sm:$0xff]   ;;  %v971_v11 = vunpack.c.h.bf16 %v1009_v7  ;;  %v1094_v12 = vld [vmem:[%s1219_s0 + $0x20] sm:$0xff]   ;;  %v975_v13 = vunpack.c.h.bf16 %v1010_v8  ;;  %v1099_v14 = vld [vmem:[%s1219_s0 + $0x18] sm:$0xff]   ;;  %v970_v29 = vunpack.c.l.bf16 %v1009_v7  ;;  %s1032_s7 = smov 112   ;;  %s390_s8 = smov 3 }
   0x4   :  { %18 = vst [vmem:[#allocation1 + $0xb8] sm:$0xff] %v955_v3  ;;  %v979_v15 = vunpack.c.h.bf16 %v1089_v10  ;;  %v1105_v16 = vld [vmem:[%s1219_s0 + $0x10] sm:$0xff]   ;;  %v983_v17 = vunpack.c.h.bf16 %v1094_v12  ;;  %v987_v18 = vunpack.c.h.bf16 %v1099_v14  ;;  %v1112_v19 = vld [vmem:[%s1219_s0 + $0x8] sm:$0xff]   ;;  %v1118_v21 = vld [vmem:[%s1219_s0] sm:$0xff]   ;;  %s412_s0 = smov 3  ;;  %v974_v30 = vunpack.c.l.bf16 %v1010_v8  ;;  %s393_s9 = smov 12 }
   0x5   :  { %48 = vst [vmem:[#allocation1 + $0xa8] sm:$0xff] %v959_v4  ;;  %v991_v20 = vunpack.c.h.bf16 %v1105_v16  ;;  %v995_v22 = vunpack.c.h.bf16 %v1112_v19  ;;  %v999_v23 = vunpack.c.h.bf16 %v1118_v21  ;;  %v978_v32 = vunpack.c.l.bf16 %v1089_v10  ;;  %s398_s10 = smov 48  ;;  %s403_s11 = smov 192 }
   0x6   :  { %78 = vst [vmem:[#allocation1 + $0x98] sm:$0xff] %v963_v5  ;;  %v982_v35 = vunpack.c.l.bf16 %v1094_v12  ;;  %v986_v37 = vunpack.c.l.bf16 %v1099_v14  ;;  %s425_s12 = smov 3  ;;  %s428_s13 = smov 12  ;;  %v990_v54 = vunpack.c.l.bf16 %v1105_v16  ;;  %v994_v61 = vunpack.c.l.bf16 %v1112_v19 }
   0x7   :  { %108 = vst [vmem:[#allocation1 + $0x88] sm:$0xff] %v967_v9  ;;  %s1033_s14 = smov 104   ;;  %s433_s15 = smov 48  ;;  %v998_v10 = vunpack.c.l.bf16 %v1118_v21  ;;  %v958_v1 = vunpack.c.l.bf16 %v1064_v1  ;;  %v962_v2 = vunpack.c.l.bf16 %v1069_v2  ;;  %v966_v6 = vunpack.c.l.bf16 %v1077_v6 }
   0x8   :  { %138 = vst [vmem:[#allocation1 + $0x78] sm:$0xff] %v971_v11  ;;  %s438_s16 = smov 192  ;;  %s495_s17 = smov 3  ;;  %vm444_vm5 = vcmask 982912   ;;  %vm479_vm6 = vcmask 917312   ;;  %vm514_vm7 = vcmask 851712  }
   0x9   :  { %168 = vst [vmem:[#allocation1 + $0x68] sm:$0xff] %v975_v13  ;;  %s498_s18 = smov 12  ;;  %s503_s19 = smov 48  ;;  %vm549_vm8 = vcmask 786112   ;;  %vm584_vm9 = vcmask 720512   ;;  %vm619_vm10 = vcmask 654912  }
   0xa   :  { %198 = vst [vmem:[#allocation1 + $0x58] sm:$0xff] %v979_v15  ;;  %s517_s20 = smov 3  ;;  %s508_s21 = smov 192  ;;  %vm654_vm11 = vcmask 589312   ;;  %vm689_vm12 = vcmask 523712   ;;  %vm724_vm13 = vcmask 458112  }
   0xb   :  { %228 = vst [vmem:[#allocation1 + $0x48] sm:$0xff] %v983_v17  ;;  %s460_s22 = smov 3  ;;  %s520_s23 = smov 12  ;;  %vm759_vm14 = vcmask 392512   ;;  %vm794_vm15 = vcmask 326912  }
   0xc   :  { %258 = vst [vmem:[#allocation1 + $0x38] sm:$0xff] %v987_v18  ;;  %s1141_s24 = smov 3  ;;  %s565_s25 = smov 3 }
   0xd   :  { %288 = vst [vmem:[#allocation1 + $0x28] sm:$0xff] %v991_v20  ;;  %s568_s26 = smov 12  ;;  %s463_s27 = smov 12 }
   0xe   :  { %v413_v24 = vld [vmem:[#allocation1 + $0x8f] ss:$16 sm:%s412_s0]   ;;  %v448_v26 = vld [vmem:[#allocation1 + $0x8e] ss:$16 sm:%s447_s2]   ;;  %318 = vst [vmem:[#allocation1 + $0x18] sm:$0xff] %v995_v22  ;;  %s468_s28 = smov 48 }
   0xf   :  { %v416_v25 = vld [vmem:[#allocation1 + $0x8f] ss:$16 sm:%s415_s30]   ;;  %v451_v28 = vld [vmem:[#allocation1 + $0x8e] ss:$16 sm:%s450_s3]   ;;  %348 = vst [vmem:[#allocation1 + $0x8] sm:$0xff] %v999_v23  ;;  %s573_s29 = smov 48 }
  0x10   :  { %v418_v27 = vsel %vm366_vm0, %v416_v25, %v413_v24  ;;  %v453_v31 = vsel %vm366_vm0, %v451_v28, %v448_v26  ;;  %v483_v33 = vld [vmem:[#allocation1 + $0x8d] ss:$16 sm:%s482_s4]   ;;  %153 = vst [vmem:[#allocation1 + $0x70] sm:$0xff] %v970_v29  ;;  %v518_v57 = vld [vmem:[#allocation1 + $0x8c] ss:$16 sm:%s517_s20]   ;;  %s473_s0 = smov 192 }
  0x11   :  { %419 = vrot.lane.b32.xlu0 %v418_v27, %s1031_s6  ;;  %454 = vrot.lane.b32.xlu1 %v453_v31, %s1032_s7  ;;  %v486_v34 = vld [vmem:[#allocation1 + $0x8d] ss:$16 sm:%s485_s5]   ;;  %183 = vst [vmem:[#allocation1 + $0x60] sm:$0xff] %v974_v30  ;;  %v521_v62 = vld [vmem:[#allocation1 + $0x8c] ss:$16 sm:%s520_s23]   ;;  %s555_s30 = smov 12 }
  0x12   :  { %v488_v36 = vsel %vm366_vm0, %v486_v34, %v483_v33  ;;  %213 = vst [vmem:[#allocation1 + $0x50] sm:$0xff] %v978_v32  ;;  %v523_v11 = vsel %vm366_vm0, %v521_v62, %v518_v57  ;;  %s1149_s2 = smov 192  ;;  %s530_s3 = smov 3  ;;  %v553_v15 = vld [vmem:[#allocation1 + $0x8b] ss:$16 sm:%s1141_s24]  }
  0x13   :  { %489 = vrot.lane.b32.xlu2 %v488_v36, %s1033_s14  ;;  %243 = vst [vmem:[#allocation1 + $0x40] sm:$0xff] %v982_v35  ;;  %s533_s4 = smov 12  ;;  %s1034_s5 = smov 96   ;;  %v556_v21 = vld [vmem:[#allocation1 + $0x8b] ss:$16 sm:%s555_s30]  }
  0x14   :  { %273 = vst [vmem:[#allocation1 + $0x30] sm:$0xff] %v986_v37  ;;  %v558_v28 = vsel %vm366_vm0, %v556_v21, %v553_v15  ;;  %s678_s20 = smov 48  ;;  %s657_s23 = smov 3 }
  0x15   :  { %303 = vst [vmem:[#allocation1 + $0x20] sm:$0xff] %v990_v54  ;;  %s643_s24 = smov 48  ;;  %s713_s30 = smov 48 }
  0x16   :  { %v391_v38 = vld [vmem:[#allocation1 + $0xf] ss:$16 sm:%s390_s8]   ;;  %v426_v43 = vld [vmem:[#allocation1 + $0xe] ss:$16 sm:%s425_s12]   ;;  %v496_v49 = vld [vmem:[#allocation1 + $0xc] ss:$16 sm:%s495_s17]  }
  0x17   :  { %v394_v39 = vld [vmem:[#allocation1 + $0xf] ss:$16 sm:%s393_s9]   ;;  %v429_v44 = vld [vmem:[#allocation1 + $0xe] ss:$16 sm:%s428_s13]   ;;  %v499_v52 = vld [vmem:[#allocation1 + $0xc] ss:$16 sm:%s498_s18]  }
  0x18   :  { %v399_v40 = vld [vmem:[#allocation1 + $0xf] ss:$16 sm:%s398_s10]   ;;  %v396_v41 = vsel %vm366_vm0, %v394_v39, %v391_v38  ;;  %v431_v46 = vsel %vm366_vm0, %v429_v44, %v426_v43  ;;  %v434_v47 = vld [vmem:[#allocation1 + $0xe] ss:$16 sm:%s433_s15]   ;;  %v504_v53 = vld [vmem:[#allocation1 + $0xc] ss:$16 sm:%s503_s19]   ;;  %v501_v56 = vsel %vm366_vm0, %v499_v52, %v496_v49 }
  0x19   :  { %v404_v42 = vld [vmem:[#allocation1 + $0xf] ss:$16 sm:%s403_s11]   ;;  %v401_v45 = vsel %vm370_vm1, %v399_v40, %v396_v41  ;;  %v439_v48 = vld [vmem:[#allocation1 + $0xe] ss:$16 sm:%s438_s16]   ;;  %v436_v51 = vsel %vm370_vm1, %v434_v47, %v431_v46  ;;  %v506_v58 = vsel %vm370_vm1, %v504_v53, %v501_v56  ;;  %v509_v59 = vld [vmem:[#allocation1 + $0xc] ss:$16 sm:%s508_s21]  }
  0x1a   :  { %v406_v50 = vsel %vm374_vm2, %v404_v42, %v401_v45  ;;  %v441_v55 = vsel %vm374_vm2, %v439_v48, %v436_v51  ;;  %v461_v60 = vld [vmem:[#allocation1 + $0xd] ss:$16 sm:%s460_s22]   ;;  %v511_v4 = vsel %vm374_vm2, %v509_v59, %v506_v58  ;;  %v566_v5 = vld [vmem:[#allocation1 + $0xa] ss:$16 sm:%s565_s25]   ;;  %333 = vst [vmem:[#allocation1 + $0x10] sm:$0xff] %v994_v61  ;;  %s600_s8 = smov 3 }
  0x1b   :  { %407 = vrot.lane.b32.xlu0 %v406_v50, %s1031_s6  ;;  %442 = vrot.lane.b32.xlu1 %v441_v55, %s1032_s7  ;;  %v464_v63 = vld [vmem:[#allocation1 + $0xd] ss:$16 sm:%s463_s27]   ;;  %v569_v7 = vld [vmem:[#allocation1 + $0xa] ss:$16 sm:%s568_s26]   ;;  %s538_s6 = smov 48  ;;  %s543_s7 = smov 192 }
  0x1c   :  { %v469_v3 = vld [vmem:[#allocation1 + $0xd] ss:$16 sm:%s468_s28]   ;;  %v466_v8 = vsel %vm366_vm0, %v464_v63, %v461_v60  ;;  %v574_v13 = vld [vmem:[#allocation1 + $0xa] ss:$16 sm:%s573_s29]   ;;  %v571_v16 = vsel %vm366_vm0, %v569_v7, %v566_v5  ;;  %v531_v17 = vld [vmem:[#allocation1 + $0xb] ss:$16 sm:%s530_s3]  }
  0x1d   :  { %v474_v9 = vld [vmem:[#allocation1 + $0xd] ss:$16 sm:%s473_s0]   ;;  %v471_v12 = vsel %vm370_vm1, %v469_v3, %v466_v8  ;;  %v534_v18 = vld [vmem:[#allocation1 + $0xb] ss:$16 sm:%s533_s4]   ;;  %s603_s9 = smov 12  ;;  %361 = vst [vmem:[#allocation1] sm:$0xff] %v998_v10  ;;  %v576_v24 = vsel %vm370_vm1, %v574_v13, %v571_v16 }
  0x1e   :  { %v476_v14 = vsel %vm374_vm2, %v474_v9, %v471_v12  ;;  %v536_v19 = vsel %vm366_vm0, %v534_v18, %v531_v17  ;;  %v539_v20 = vld [vmem:[#allocation1 + $0xb] ss:$16 sm:%s538_s6]   ;;  %33 = vst [vmem:[#allocation1 + $0xb0] sm:$0xff] %v954_v0  ;;  %v579_v25 = vld [vmem:[#allocation1 + $0xa] ss:$16 sm:%s1149_s2]   ;;  %s608_s10 = smov 48 }
  0x1f   :  { %477 = vrot.lane.b32.xlu2 %v476_v14, %s1033_s14  ;;  %v541_v22 = vsel %vm370_vm1, %v539_v20, %v536_v19  ;;  %v544_v23 = vld [vmem:[#allocation1 + $0xb] ss:$16 sm:%s543_s7]   ;;  %63 = vst [vmem:[#allocation1 + $0xa0] sm:$0xff] %v958_v1  ;;  %v601_v26 = vld [vmem:[#allocation1 + $0x9] ss:$16 sm:%s600_s8]   ;;  %v581_v30 = vsel %vm374_vm2, %v579_v25, %v576_v24  ;;  %s613_s11 = smov 192 }
  0x20   :  { %v604_v27 = vld [vmem:[#allocation1 + $0x9] ss:$16 sm:%s603_s9]   ;;  %93 = vst [vmem:[#allocation1 + $0x90] sm:$0xff] %v962_v2  ;;  %v546_v29 = vsel %vm374_vm2, %v544_v23, %v541_v22  ;;  %s622_s12 = smov 3  ;;  %s587_s13 = smov 3 }
  0x21   :  { %123 = vst [vmem:[#allocation1 + $0x80] sm:$0xff] %v966_v6  ;;  %v606_v31 = vsel %vm366_vm0, %v604_v27, %v601_v26  ;;  %v609_v32 = vld [vmem:[#allocation1 + $0x9] ss:$16 sm:%s608_s10]   ;;  %s1035_s14 = smov 88   ;;  %s625_s15 = smov 12 }
  0x22   :  { %s590_s16 = smov 12  ;;  %s1036_s17 = smov 80   ;;  %v611_v33 = vsel %vm370_vm1, %v609_v32, %v606_v31  ;;  %v614_v34 = vld [vmem:[#allocation1 + $0x9] ss:$16 sm:%s613_s11]   ;;  %v588_v35 = vld [vmem:[#allocation1 + $0x8a] ss:$16 sm:%s587_s13]  }
  0x23   :  { %512 = vrot.lane.b32.xlu0 %v511_v4, %s1034_s5  ;;  %524 = vrot.lane.b32.xlu1 %v523_v11, %s1034_s5  ;;  %s670_s18 = smov 3  ;;  %s673_s19 = smov 12  ;;  %v623_v36 = vld [vmem:[#allocation1 + $0x89] ss:$16 sm:%s622_s12]   ;;  %v591_v38 = vld [vmem:[#allocation1 + $0x8a] ss:$16 sm:%s590_s16]   ;;  %v616_v39 = vsel %vm374_vm2, %v614_v34, %v611_v33 }
  0x24   :  { %v626_v37 = vld [vmem:[#allocation1 + $0x89] ss:$16 sm:%s625_s15]   ;;  %v671_v40 = vld [vmem:[#allocation1 + $0x7] ss:$16 sm:%s670_s18]   ;;  %v593_v42 = vsel %vm366_vm0, %v591_v38, %v588_v35  ;;  %s635_s21 = smov 3  ;;  %s638_s22 = smov 12 }
  0x25   :  { %v674_v41 = vld [vmem:[#allocation1 + $0x7] ss:$16 sm:%s673_s19]   ;;  %v628_v43 = vsel %vm366_vm0, %v626_v37, %v623_v36  ;;  %v636_v44 = vld [vmem:[#allocation1 + $0x8] ss:$16 sm:%s635_s21]   ;;  %s660_s25 = smov 12  ;;  %s648_s26 = smov 192 }
  0x26   :  { %v639_v45 = vld [vmem:[#allocation1 + $0x8] ss:$16 sm:%s638_s22]   ;;  %s1037_s27 = smov 72   ;;  %v676_v48 = vsel %vm366_vm0, %v674_v41, %v671_v40  ;;  %v679_v49 = vld [vmem:[#allocation1 + $0x7] ss:$16 sm:%s678_s20]   ;;  %s683_s28 = smov 192 }
  0x27   :  { %547 = vrot.lane.b32.xlu2 %v546_v29, %s1035_s14  ;;  %v641_v46 = vsel %vm366_vm0, %v639_v45, %v636_v44  ;;  %v644_v47 = vld [vmem:[#allocation1 + $0x8] ss:$16 sm:%s643_s24]   ;;  %s705_s29 = smov 3  ;;  %s708_s0 = smov 12  ;;  %v681_v54 = vsel %vm370_vm1, %v679_v49, %v676_v48  ;;  %v684_v55 = vld [vmem:[#allocation1 + $0x7] ss:$16 sm:%s683_s28]  }
  0x28   :  { %v658_v50 = vld [vmem:[#allocation1 + $0x88] ss:$16 sm:%s657_s23]   ;;  %v646_v52 = vsel %vm370_vm1, %v644_v47, %v641_v46  ;;  %v706_v56 = vld [vmem:[#allocation1 + $0x6] ss:$16 sm:%s705_s29]   ;;  %v686_v60 = vsel %vm374_vm2, %v684_v55, %v681_v54  ;;  %s718_s2 = smov 192  ;;  %s692_s3 = smov 3 }
  0x29   :  { %v661_v51 = vld [vmem:[#allocation1 + $0x88] ss:$16 sm:%s660_s25]   ;;  %v709_v57 = vld [vmem:[#allocation1 + $0x6] ss:$16 sm:%s708_s0]   ;;  %s695_s4 = smov 12  ;;  %s1038_s5 = smov 64  }
  0x2a   :  { %v649_v53 = vld [vmem:[#allocation1 + $0x8] ss:$16 sm:%s648_s26]   ;;  %v663_v58 = vsel %vm366_vm0, %v661_v51, %v658_v50  ;;  %v711_v61 = vsel %vm366_vm0, %v709_v57, %v706_v56  ;;  %v714_v62 = vld [vmem:[#allocation1 + $0x6] ss:$16 sm:%s713_s30]   ;;  %s727_s6 = smov 3  ;;  %s730_s7 = smov 12 }
  0x2b   :  { %559 = vrot.lane.b32.xlu0 %v558_v28, %s1035_s14  ;;  %582 = vrot.lane.b32.xlu1 %v581_v30, %s1036_s17  ;;  %v651_v59 = vsel %vm374_vm2, %v649_v53, %v646_v52  ;;  %s1039_s8 = smov 56   ;;  %v719_v63 = vld [vmem:[#allocation1 + $0x6] ss:$16 sm:%s718_s2]   ;;  %s775_s9 = smov 3  ;;  %v716_v3 = vsel %vm370_vm1, %v714_v62, %v711_v61  ;;  %v693_v4 = vld [vmem:[#allocation1 + $0x87] ss:$16 sm:%s692_s3]  }
  0x2c   :  { %s778_s10 = smov 12  ;;  %v696_v5 = vld [vmem:[#allocation1 + $0x87] ss:$16 sm:%s695_s4]   ;;  %s740_s11 = smov 3  ;;  %v728_v7 = vld [vmem:[#allocation1 + $0x86] ss:$16 sm:%s727_s6]   ;;  %v721_v11 = vsel %vm374_vm2, %v719_v63, %v716_v3 }
  0x2d   :  { %s743_s12 = smov 12  ;;  %v731_v8 = vld [vmem:[#allocation1 + $0x86] ss:$16 sm:%s730_s7]   ;;  %v741_v9 = vld [vmem:[#allocation1 + $0x5] ss:$16 sm:%s740_s11]   ;;  %s748_s13 = smov 48  ;;  %v698_v13 = vsel %vm366_vm0, %v696_v5, %v693_v4 }
  0x2e   :  { %v744_v10 = vld [vmem:[#allocation1 + $0x5] ss:$16 sm:%s743_s12]   ;;  %v776_v12 = vld [vmem:[#allocation1 + $0x4] ss:$16 sm:%s775_s9]   ;;  %s783_s14 = smov 48  ;;  %v733_v14 = vsel %vm366_vm0, %v731_v8, %v728_v7  ;;  %s762_s15 = smov 3 }
  0x2f   :  { %594 = vrot.lane.b32.xlu2 %v593_v42, %s1036_s17  ;;  %v779_v0 = vld [vmem:[#allocation1 + $0x4] ss:$16 sm:%s778_s10]   ;;  %s765_s16 = smov 12  ;;  %v746_v1 = vsel %vm366_vm0, %v744_v10, %v741_v9  ;;  %v749_v15 = vld [vmem:[#allocation1 + $0x5] ss:$16 sm:%s748_s13]   ;;  %s753_s17 = smov 192 }
  0x30   :  { %s1040_s18 = smov 48   ;;  %v781_v16 = vsel %vm366_vm0, %v779_v0, %v776_v12  ;;  %v784_v17 = vld [vmem:[#allocation1 + $0x4] ss:$16 sm:%s783_s14]   ;;  %s788_s19 = smov 192  ;;  %v763_v18 = vld [vmem:[#allocation1 + $0x85] ss:$16 sm:%s762_s15]   ;;  %v751_v19 = vsel %vm370_vm1, %v749_v15, %v746_v1 }
  0x31   :  { %s810_s20 = smov 3  ;;  %s813_s21 = smov 12  ;;  %v766_v2 = vld [vmem:[#allocation1 + $0x85] ss:$16 sm:%s765_s16]   ;;  %v786_v6 = vsel %vm370_vm1, %v784_v17, %v781_v16  ;;  %v789_v21 = vld [vmem:[#allocation1 + $0x4] ss:$16 sm:%s788_s19]  }
  0x32   :  { %v754_v20 = vld [vmem:[#allocation1 + $0x5] ss:$16 sm:%s753_s17]   ;;  %v811_v22 = vld [vmem:[#allocation1 + $0x3] ss:$16 sm:%s810_s20]   ;;  %s818_s22 = smov 48  ;;  %v768_v24 = vsel %vm366_vm0, %v766_v2, %v763_v18  ;;  %v791_v26 = vsel %vm374_vm2, %v789_v21, %v786_v6  ;;  %s823_s23 = smov 192 }
  0x33   :  { %617 = vrot.lane.b32.xlu0 %v616_v39, %s1037_s27  ;;  %629 = vrot.lane.b32.xlu1 %v628_v43, %s1037_s27  ;;  %v814_v23 = vld [vmem:[#allocation1 + $0x3] ss:$16 sm:%s813_s21]   ;;  %v756_v25 = vsel %vm374_vm2, %v754_v20, %v751_v19  ;;  %s797_s24 = smov 3  ;;  %s800_s25 = smov 12 }
  0x34   :  { %v816_v27 = vsel %vm366_vm0, %v814_v23, %v811_v22  ;;  %v819_v28 = vld [vmem:[#allocation1 + $0x3] ss:$16 sm:%s818_s22]   ;;  %s1041_s26 = smov 40   ;;  %s832_s27 = smov 3  ;;  %v798_v31 = vld [vmem:[#allocation1 + $0x84] ss:$16 sm:%s797_s24]  }
  0x35   :  { %s835_s28 = smov 12  ;;  %s1042_s29 = smov 32   ;;  %v824_v29 = vld [vmem:[#allocation1 + $0x3] ss:$16 sm:%s823_s23]   ;;  %v821_v30 = vsel %vm370_vm1, %v819_v28, %v816_v27  ;;  %v801_v32 = vld [vmem:[#allocation1 + $0x84] ss:$16 sm:%s800_s25]  }
  0x36   :  { %s845_s0 = smov 3  ;;  %s848_s30 = smov 12  ;;  %v833_v33 = vld [vmem:[#allocation1 + $0x83] ss:$16 sm:%s832_s27]   ;;  %v826_v37 = vsel %vm374_vm2, %v824_v29, %v821_v30  ;;  %v803_v40 = vsel %vm366_vm0, %v801_v32, %v798_v31 }
  0x37   :  { %652 = vrot.lane.b32.xlu2 %v651_v59, %s1038_s5  ;;  %s880_s2 = smov 3  ;;  %s883_s3 = smov 12  ;;  %v836_v34 = vld [vmem:[#allocation1 + $0x83] ss:$16 sm:%s835_s28]   ;;  %v846_v35 = vld [vmem:[#allocation1 + $0x2] ss:$16 sm:%s845_s0]  }
  0x38   :  { %v849_v36 = vld [vmem:[#allocation1 + $0x2] ss:$16 sm:%s848_s30]   ;;  %s853_s4 = smov 48  ;;  %v881_v38 = vld [vmem:[#allocation1 + $0x1] ss:$16 sm:%s880_s2]   ;;  %v838_v41 = vsel %vm366_vm0, %v836_v34, %v833_v33  ;;  %s867_s6 = smov 3 }
  0x39   :  { %v884_v39 = vld [vmem:[#allocation1 + $0x1] ss:$16 sm:%s883_s3]   ;;  %s870_s7 = smov 12  ;;  %v851_v42 = vsel %vm366_vm0, %v849_v36, %v846_v35  ;;  %v854_v43 = vld [vmem:[#allocation1 + $0x2] ss:$16 sm:%s853_s4]   ;;  %s1043_s9 = smov 24  }
  0x3a   :  { %v886_v44 = vsel %vm366_vm0, %v884_v39, %v881_v38  ;;  %s893_s10 = smov 192  ;;  %v868_v46 = vld [vmem:[#allocation1 + $0x82] ss:$16 sm:%s867_s6]   ;;  %v856_v48 = vsel %vm370_vm1, %v854_v43, %v851_v42  ;;  %s902_s11 = smov 3 }
  0x3b   :  { %664 = vrot.lane.b32.xlu0 %v663_v58, %s1038_s5  ;;  %687 = vrot.lane.b32.xlu1 %v686_v60, %s1039_s8  ;;  %s888_s5 = smov 48  ;;  %v871_v47 = vld [vmem:[#allocation1 + $0x82] ss:$16 sm:%s870_s7]   ;;  %v894_v51 = vld [vmem:[#allocation1 + $0x1] ss:$16 sm:%s893_s10]   ;;  %s905_s12 = smov 12 }
  0x3c   :  { %v889_v45 = vld [vmem:[#allocation1 + $0x1] ss:$16 sm:%s888_s5]   ;;  %v873_v52 = vsel %vm366_vm0, %v871_v47, %v868_v46  ;;  %s1044_s13 = smov 16   ;;  %s1045_s14 = smov 8  }
  0x3d   :  { %v891_v50 = vsel %vm370_vm1, %v889_v45, %v886_v44  ;;  %v903_v55 = vld [vmem:[#allocation1 + $0x81] ss:$16 sm:%s902_s11]   ;;  %s379_s15 = smov 3  ;;  %s382_s16 = smov 12 }
  0x3e   :  { %v896_v54 = vsel %vm374_vm2, %v894_v51, %v891_v50  ;;  %v906_v56 = vld [vmem:[#allocation1 + $0x81] ss:$16 sm:%s905_s12]   ;;  %s362_s17 = smov 3  ;;  %v380_v58 = vld [vmem:[#allocation1 + $0x80] ss:$16 sm:%s379_s15]   ;;  %s368_s19 = smov 48 }
  0x3f   :  { %699 = vrot.lane.b32.xlu2 %v698_v13, %s1039_s8  ;;  %s858_s8 = smov 192  ;;  %v908_v57 = vsel %vm366_vm0, %v906_v56, %v903_v55  ;;  %v383_v59 = vld [vmem:[#allocation1 + $0x80] ss:$16 sm:%s382_s16]   ;;  %s372_s20 = smov 192 }
  0x40   :  { %v859_v49 = vld [vmem:[#allocation1 + $0x2] ss:$16 sm:%s858_s8]   ;;  %v385_v60 = vsel %vm366_vm0, %v383_v59, %v380_v58  ;;  %v363_v61 = vld [vmem:[#allocation1] ss:$16 sm:%s362_s17]  }
  0x41   :  { %v861_v53 = vsel %vm374_vm2, %v859_v49, %v856_v48  ;;  %388 = vst.msk [vmem:[#allocation0 + $0x8] sm:$0xf] %vm376_vm3, %v385_v60   ;;  %v369_v63 = vld [vmem:[#allocation1] ss:$16 sm:%s368_s19]  }
  0x42   :  { %v373_v4 = vld [vmem:[#allocation1] ss:$16 sm:%s372_s20]  }
  0x43   :  { %722 = vrot.lane.b32.xlu0 %v721_v11, %s1040_s18  ;;  %734 = vrot.lane.b32.xlu1 %v733_v14, %s1040_s18  ;;  %s364_s18 = smov 12 }
  0x44   :  { %v365_v62 = vld [vmem:[#allocation1] ss:$16 sm:%s364_s18]  }
  0x45   :  { %v367_v3 = vsel %vm366_vm0, %v365_v62, %v363_v61  ;;  %vm829_vm0 = vcmask 261312  }
  0x46   :  { %v371_v5 = vsel %vm370_vm1, %v369_v63, %v367_v3  ;;  %vm864_vm1 = vcmask 195712  }
  0x47   :  { %757 = vrot.lane.b32.xlu2 %v756_v25, %s1041_s26  ;;  %v375_v7 = vsel %vm374_vm2, %v373_v4, %v371_v5  ;;  %vm899_vm2 = vcmask 130112  }
  0x48   :  { %377 = vst.msk [vmem:[#allocation0] sm:$0xff] %vm376_vm3, %v375_v7  }
  0x4b   :  { %769 = vrot.lane.b32.xlu0 %v768_v24, %s1041_s26  ;;  %792 = vrot.lane.b32.xlu1 %v791_v26, %s1042_s29 }
  0x4f   :  { %804 = vrot.lane.b32.xlu2 %v803_v40, %s1042_s29 }
  0x53   :  { %827 = vrot.lane.b32.xlu0 %v826_v37, %s1043_s9  ;;  %839 = vrot.lane.b32.xlu1 %v838_v41, %s1043_s9 }
  0x57   :  { %862 = vrot.lane.b32.xlu2 %v861_v53, %s1044_s13 }
  0x5b   :  { %874 = vrot.lane.b32.xlu0 %v873_v52, %s1044_s13  ;;  %897 = vrot.lane.b32.xlu1 %v896_v54, %s1045_s14 }
  0x5f   :  { %909 = vrot.lane.b32.xlu2 %v908_v57, %s1045_s14 }
  0x6d   :  { %v490_v8 = vpop.permute.xlu2 %489  }
  0x79   :  { %v478_v9 = vpop.permute.xlu2 %477  }
  0x81   :  { %v548_v12 = vpop.permute.xlu2 %547  }
  0x83   :  { %v420_v10 = vpop.permute.xlu0 %419   ;;  %v455_v11 = vpop.permute.xlu1 %454  }
  0x84   :  { %423 = vst.msk [vmem:[#allocation0 + $0x8] sm:$0xf] %vm409_vm4, %v420_v10  }
  0x85   :  { %458 = vst.msk [vmem:[#allocation0 + $0x8] sm:$0xf] %vm444_vm5, %v455_v11  }
  0x86   :  { %493 = vst.msk [vmem:[#allocation0 + $0x8] sm:$0xf] %vm479_vm6, %v490_v8  }
  0x89   :  { %v595_v13 = vpop.permute.xlu2 %594  }
  0x8d   :  { %v408_v0 = vpop.permute.xlu0 %407   ;;  %v443_v14 = vpop.permute.xlu1 %442  }
  0x8e   :  { %410 = vst.msk [vmem:[#allocation0] sm:$0xff] %vm409_vm4, %v408_v0  }
  0x8f   :  { %445 = vst.msk [vmem:[#allocation0] sm:$0xff] %vm444_vm5, %v443_v14  }
  0x90   :  { %480 = vst.msk [vmem:[#allocation0] sm:$0xff] %vm479_vm6, %v478_v9  }
  0x91   :  { %v653_v15 = vpop.permute.xlu2 %652  }
  0x95   :  { %v513_v1 = vpop.permute.xlu0 %512   ;;  %v525_v16 = vpop.permute.xlu1 %524  }
  0x96   :  { %515 = vst.msk [vmem:[#allocation0] sm:$0xff] %vm514_vm7, %v513_v1  }
  0x97   :  { %550 = vst.msk [vmem:[#allocation0] sm:$0xff] %vm549_vm8, %v548_v12  }
  0x98   :  { %528 = vst.msk [vmem:[#allocation0 + $0x8] sm:$0xf] %vm514_vm7, %v525_v16  }
  0x99   :  { %v700_v18 = vpop.permute.xlu2 %699  }
  0x9d   :  { %v560_v17 = vpop.permute.xlu0 %559   ;;  %v583_v2 = vpop.permute.xlu1 %582  }
  0x9e   :  { %563 = vst.msk [vmem:[#allocation0 + $0x8] sm:$0xf] %vm549_vm8, %v560_v17  }
  0x9f   :  { %598 = vst.msk [vmem:[#allocation0 + $0x8] sm:$0xf] %vm584_vm9, %v595_v13  }
  0xa0   :  { %585 = vst.msk [vmem:[#allocation0] sm:$0xff] %vm584_vm9, %v583_v2  }
  0xa1   :  { %v758_v20 = vpop.permute.xlu2 %757  }
  0xa5   :  { %v618_v19 = vpop.permute.xlu0 %617   ;;  %v630_v6 = vpop.permute.xlu1 %629  }
  0xa6   :  { %620 = vst.msk [vmem:[#allocation0] sm:$0xff] %vm619_vm10, %v618_v19  }
  0xa7   :  { %655 = vst.msk [vmem:[#allocation0] sm:$0xff] %vm654_vm11, %v653_v15  }
  0xa8   :  { %633 = vst.msk [vmem:[#allocation0 + $0x8] sm:$0xf] %vm619_vm10, %v630_v6  }
  0xa9   :  { %v805_v22 = vpop.permute.xlu2 %804  }
  0xad   :  { %v665_v21 = vpop.permute.xlu0 %664   ;;  %v688_v23 = vpop.permute.xlu1 %687  }
  0xae   :  { %668 = vst.msk [vmem:[#allocation0 + $0x8] sm:$0xf] %vm654_vm11, %v665_v21  }
  0xaf   :  { %690 = vst.msk [vmem:[#allocation0] sm:$0xff] %vm689_vm12, %v688_v23  }
  0xb0   :  { %703 = vst.msk [vmem:[#allocation0 + $0x8] sm:$0xf] %vm689_vm12, %v700_v18  }
  0xb1   :  { %v863_v25 = vpop.permute.xlu2 %862  }
  0xb5   :  { %v723_v24 = vpop.permute.xlu0 %722   ;;  %v735_v26 = vpop.permute.xlu1 %734  }
  0xb6   :  { %725 = vst.msk [vmem:[#allocation0] sm:$0xff] %vm724_vm13, %v723_v24  }
  0xb7   :  { %738 = vst.msk [vmem:[#allocation0 + $0x8] sm:$0xf] %vm724_vm13, %v735_v26  }
  0xb8   :  { %760 = vst.msk [vmem:[#allocation0] sm:$0xff] %vm759_vm14, %v758_v20  }
  0xb9   :  { %v910_v28 = vpop.permute.xlu2 %909  }
  0xbd   :  { %v770_v27 = vpop.permute.xlu0 %769   ;;  %v793_v29 = vpop.permute.xlu1 %792  }
  0xbe   :  { %773 = vst.msk [vmem:[#allocation0 + $0x8] sm:$0xf] %vm759_vm14, %v770_v27  }
  0xbf   :  { %795 = vst.msk [vmem:[#allocation0] sm:$0xff] %vm794_vm15, %v793_v29  }
  0xc0   :  { %808 = vst.msk [vmem:[#allocation0 + $0x8] sm:$0xf] %vm794_vm15, %v805_v22  }
  0xc5   :  { %v828_v30 = vpop.permute.xlu0 %827   ;;  %v840_v31 = vpop.permute.xlu1 %839  }
  0xc6   :  { %830 = vst.msk [vmem:[#allocation0] sm:$0xff] %vm829_vm0, %v828_v30  }
  0xc7   :  { %843 = vst.msk [vmem:[#allocation0 + $0x8] sm:$0xf] %vm829_vm0, %v840_v31  }
  0xc8   :  { %865 = vst.msk [vmem:[#allocation0] sm:$0xff] %vm864_vm1, %v863_v25  }
  0xcd   :  { %v875_v32 = vpop.permute.xlu0 %874   ;;  %v898_v33 = vpop.permute.xlu1 %897  }
  0xce   :  { %878 = vst.msk [vmem:[#allocation0 + $0x8] sm:$0xf] %vm864_vm1, %v875_v32  }
  0xcf   :  { %900 = vst.msk [vmem:[#allocation0] sm:$0xff] %vm899_vm2, %v898_v33  }
  0xd0   :  { %913 = vst.msk [vmem:[#allocation0 + $0x8] sm:$0xf] %vm899_vm2, %v910_v28  }
  0xd6   :  { %v916_v34 = vld [vmem:[#allocation0] sm:$0xff] }
  0xd7   :  { %v922_v35 = vld [vmem:[#allocation0 + $0x8] sm:$0xff] }
  0xd8   :  { %v1003_v36 = vpack.c.bf16 %v922_v35, %v916_v34 }
  0xda   :  { %1004 = vst [vmem:[%s1220_s1] sm:$0xff] %v1003_v36  }

// kernel: deep_location8_forward.4
= control target key start
LH: loop header
LB: loop body
LE: loop exit
PB: predicated region body
PF: predicated region fallthrough
CT: control target
= control target key end

     0   :  { %v884_v3 = vmov 0   ;;  %vm377_vm0 = vcmask 392192   ;;  %s1198_s0 = inlined_call_operand.vmem [shape: bf16[432,128], index: 0, kind: input, shape index: {}]   ;;  %s1199_s2 = inlined_call_operand.vmem [shape: f32[64,1], index: 2, kind: input, shape index: {}]   ;;  %s1200_s1 = inlined_call_operand.vmem [shape: bf16[64,432], index: 1, kind: input, shape index: {}]   ;;  %s1201_s3 = inlined_call_operand.vmem [shape: f32[64,1], index: 3, kind: input, shape index: {}]   ;;  %s1202_s4 = inlined_call_operand.vmem [shape: f32[64,1], index: 4, kind: input, shape index: {}]   ;;  %s1203_s5 = inlined_call_operand.vmem [shape: bf16[32,128], index: 5, kind: output, shape index: {}]  }
   0x1   :  { %v849_v0 = vld [vmem:[%s1198_s0 + $0x38] sm:$0xff]  ;;  %882 = vset.pattern.permute.xlu1 %v884_v3  ;;  %881 = vset.pattern.permute.xlu0 %v884_v3  ;;  %v93_v4 = vld [vmem:[%s1199_s2 + $0x10] sm:$0xff]  ;;  %v91_v5 = vld [vmem:[%s1199_s2] sm:$0xff] }
   0x2   :  { %v857_v1 = vld [vmem:[%s1198_s0 + $0x78] sm:$0xff]  ;;  %883 = vset.pattern.permute.xlu2 %v884_v3  ;;  %390 = vmatpush.bf16.msra.mxu0 %v849_v0  ;;  %v848_v6 = vld [vmem:[%s1198_s0 + $0x30] sm:$0xff]  ;;  %v847_v10 = vld [vmem:[%s1198_s0 + $0x28] sm:$0xff] }
   0x3   :  { %v865_v2 = vld [vmem:[%s1198_s0 + $0xb8] sm:$0xff]  ;;  %419 = vmatpush.bf16.msra.mxu1 %v857_v1  ;;  %v856_v7 = vld [vmem:[%s1198_s0 + $0x70] sm:$0xff]  ;;  %111 = vperm.xlu1 %882, %v93_v4   ;;  %v855_v11 = vld [vmem:[%s1198_s0 + $0x68] sm:$0xff] }
   0x4   :  { %448 = vmatpush.bf16.msra.mxu2 %v865_v2  ;;  %v864_v8 = vld [vmem:[%s1198_s0 + $0xb0] sm:$0xff]  ;;  %101 = vperm.xlu0 %881, %v91_v5   ;;  %v863_v12 = vld [vmem:[%s1198_s0 + $0xa8] sm:$0xff]  ;;  %v94_v13 = vld [vmem:[%s1199_s2 + $0x18] sm:$0xff] }
   0x5   :  { %v868_v9 = vld [vmem:[%s1198_s0 + $0xd0] sm:$0xff]  ;;  %v867_v14 = vld [vmem:[%s1198_s0 + $0xc8] sm:$0xff]  ;;  %v846_v16 = vld [vmem:[%s1198_s0 + $0x20] sm:$0xff] }
   0x6   :  { %391 = vmatpush.bf16.msra.mxu0 %v848_v6  ;;  %482 = vmatpush.bf16.msra.mxu3 %v868_v9  ;;  %v92_v15 = vld [vmem:[%s1199_s2 + $0x8] sm:$0xff]  ;;  %v854_v17 = vld [vmem:[%s1198_s0 + $0x60] sm:$0xff]  ;;  %v662_v22 = vld [vmem:[%s1200_s1 + $0x18] sm:$0xf0] }
   0x7   :  { %420 = vmatpush.bf16.msra.mxu1 %v856_v7  ;;  %v95_v18 = vld [vmem:[%s1199_s2 + $0x20] sm:$0xff]  ;;  %v827_v21 = vld [vmem:[%s1200_s1 + $0xc] sm:$0xf]  ;;  %v845_v23 = vld [vmem:[%s1198_s0 + $0x18] sm:$0xff] }
   0x8   :  { %449 = vmatpush.bf16.msra.mxu2 %v864_v8  ;;  %v862_v19 = vld [vmem:[%s1198_s0 + $0xa0] sm:$0xff]  ;;  %121 = vperm.xlu2 %883, %v95_v18   ;;  %v853_v24 = vld [vmem:[%s1198_s0 + $0x58] sm:$0xff]  ;;  %v665_v27 = vor.u32 %v827_v21, %v662_v22  ;;  %v97_v28 = vld [vmem:[%s1199_s2 + $0x30] sm:$0xff] }
   0x9   :  { %v866_v20 = vld [vmem:[%s1198_s0 + $0xc0] sm:$0xff]  ;;  %v861_v25 = vld [vmem:[%s1198_s0 + $0x98] sm:$0xff]  ;;  %v844_v29 = vld [vmem:[%s1198_s0 + $0x10] sm:$0xff] }
   0xa   :  { %392 = vmatpush.bf16.msra.mxu0 %v847_v10  ;;  %483 = vmatpush.bf16.msra.mxu3 %v867_v14  ;;  %v98_v26 = vld [vmem:[%s1199_s2 + $0x38] sm:$0xff]  ;;  %v852_v30 = vld [vmem:[%s1198_s0 + $0x50] sm:$0xff]  ;;  %v96_v31 = vld [vmem:[%s1199_s2 + $0x28] sm:$0xff] }
   0xb   :  { %421 = vmatpush.bf16.msra.mxu1 %v855_v11  ;;  %116 = vperm.xlu1 %882, %v94_v13   ;;  %v860_v32 = vld [vmem:[%s1198_s0 + $0x90] sm:$0xff]  ;;  %v843_v33 = vld [vmem:[%s1198_s0 + $0x8] sm:$0xff]  ;;  %v842_v38 = vld [vmem:[%s1198_s0] sm:$0xff] }
   0xc   :  { %450 = vmatpush.bf16.msra.mxu2 %v863_v12  ;;  %106 = vperm.xlu0 %881, %v92_v15   ;;  %v851_v34 = vld [vmem:[%s1198_s0 + $0x48] sm:$0xff]  ;;  %v524_v36 = vld [vmem:[%s1201_s3 + $0x10] sm:$0xff]  ;;  %v850_v39 = vld [vmem:[%s1198_s0 + $0x40] sm:$0xff] }
   0xd   :  { %v859_v35 = vld [vmem:[%s1198_s0 + $0x88] sm:$0xff]  ;;  %v652_v40 = vld [vmem:[%s1200_s1] sm:$0xf]  ;;  %v828_v41 = vld [vmem:[%s1200_s1 + $0xc] sm:$0xf0] }
   0xe   :  { %393 = vmatpush.bf16.msra.mxu0 %v846_v16  ;;  %484 = vmatpush.bf16.msra.mxu3 %v866_v20  ;;  %v523_v37 = vld [vmem:[%s1201_s3 + $0x8] sm:$0xff]  ;;  %v826_v42 = vld [vmem:[%s1200_s1 + $0x4] sm:$0xf]  ;;  %v654_v43 = vld [vmem:[%s1200_s1 + $0x10] sm:$0xf0]  ;;  %v653_v48 = vor.u32 %v828_v41, %v652_v40 }
   0xf   :  { %422 = vmatpush.bf16.msra.mxu1 %v854_v17  ;;  %v522_v44 = vld [vmem:[%s1201_s3] sm:$0xff]  ;;  %v660_v46 = vld [vmem:[%s1200_s1 + $0x8] sm:$0xf]  ;;  %v829_v47 = vld [vmem:[%s1200_s1 + $0x14] sm:$0xf0]  ;;  %v657_v49 = vor.u32 %v826_v42, %v654_v43 }
  0x10   :  { %451 = vmatpush.bf16.msra.mxu2 %v862_v19  ;;  %126 = vperm.xlu2 %883, %v96_v31   ;;  %v858_v45 = vld [vmem:[%s1198_s0 + $0x80] sm:$0xff]  ;;  %v831_v50 = vld [vmem:[%s1200_s1 + $0x2c] sm:$0xf]  ;;  %v678_v51 = vld [vmem:[%s1200_s1 + $0x38] sm:$0xf0]  ;;  %v661_v52 = vor.u32 %v829_v47, %v660_v46 }
  0x11   :  { %822 = vmatmul.msk.bf16.vlgmr.msra.gmra.mxu3 %vm377_vm0, %v665_v27  ;;  %v527_v53 = vld [vmem:[%s1201_s3 + $0x28] sm:$0xff]  ;;  %v681_v54 = vor.u32 %v831_v50, %v678_v51  ;;  %v526_v55 = vld [vmem:[%s1201_s3 + $0x20] sm:$0xff]  ;;  %v525_v56 = vld [vmem:[%s1201_s3 + $0x18] sm:$0xff] }
  0x12   :  { %394 = vmatpush.bf16.msra.mxu0 %v845_v23  ;;  %v578_v57 = vld [vmem:[%s1202_s4] sm:$0xff]  ;;  %v529_v58 = vld [vmem:[%s1201_s3 + $0x38] sm:$0xff]  ;;  %v832_v60 = vld [vmem:[%s1200_s1 + $0x2c] sm:$0xf0] }
  0x13   :  { %423 = vmatpush.bf16.msra.mxu1 %v853_v24  ;;  %136 = vperm.xlu1 %882, %v98_v26   ;;  %v668_v59 = vld [vmem:[%s1200_s1 + $0x20] sm:$0xf]  ;;  %v830_v61 = vld [vmem:[%s1200_s1 + $0x24] sm:$0xf]  ;;  %v670_v62 = vld [vmem:[%s1200_s1 + $0x30] sm:$0xf0] }
  0x14   :  { %452 = vmatpush.bf16.msra.mxu2 %v861_v25  ;;  %131 = vperm.xlu0 %881, %v97_v28   ;;  %v528_v63 = vld [vmem:[%s1201_s3 + $0x30] sm:$0xff]  ;;  %v676_v0 = vld [vmem:[%s1200_s1 + $0x28] sm:$0xf]  ;;  %v833_v1 = vld [vmem:[%s1200_s1 + $0x34] sm:$0xf0]  ;;  %v669_v2 = vor.u32 %v832_v60, %v668_v59  ;;  %v673_v3 = vor.u32 %v830_v61, %v670_v62 }
  0x15   :  { %v835_v4 = vld [vmem:[%s1200_s1 + $0x4c] sm:$0xf]  ;;  %v694_v5 = vld [vmem:[%s1200_s1 + $0x58] sm:$0xf0]  ;;  %v677_v6 = vor.u32 %v833_v1, %v676_v0  ;;  %v580_v9 = vld [vmem:[%s1202_s4 + $0x10] sm:$0xff] }
  0x16   :  { %395 = vmatpush.bf16.msra.mxu0 %v844_v29  ;;  %v581_v7 = vld [vmem:[%s1202_s4 + $0x18] sm:$0xff]  ;;  %v697_v8 = vor.u32 %v835_v4, %v694_v5  ;;  %v579_v10 = vld [vmem:[%s1202_s4 + $0x8] sm:$0xff]  ;;  %v584_v11 = vld [vmem:[%s1202_s4 + $0x30] sm:$0xff] }
  0x17   :  { %424 = vmatpush.bf16.msra.mxu1 %v852_v30  ;;  %v583_v12 = vld [vmem:[%s1202_s4 + $0x28] sm:$0xff]  ;;  %v684_v13 = vld [vmem:[%s1200_s1 + $0x40] sm:$0xf]  ;;  %v836_v14 = vld [vmem:[%s1200_s1 + $0x4c] sm:$0xf0] }
  0x18   :  { %453 = vmatpush.bf16.msra.mxu2 %v860_v32  ;;  %532 = vperm.xlu2 %883, %v522_v44   ;;  %v834_v15 = vld [vmem:[%s1200_s1 + $0x44] sm:$0xf]  ;;  %v686_v16 = vld [vmem:[%s1200_s1 + $0x50] sm:$0xf0]  ;;  %v692_v18 = vld [vmem:[%s1200_s1 + $0x48] sm:$0xf]  ;;  %v685_v20 = vor.u32 %v836_v14, %v684_v13 }
  0x19   :  { %v582_v17 = vld [vmem:[%s1202_s4 + $0x20] sm:$0xff]  ;;  %v837_v19 = vld [vmem:[%s1200_s1 + $0x54] sm:$0xf0]  ;;  %v689_v21 = vor.u32 %v834_v15, %v686_v16  ;;  %v839_v22 = vld [vmem:[%s1200_s1 + $0x6c] sm:$0xf] }
  0x1a   :  { %396 = vmatpush.bf16.msra.mxu0 %v843_v33  ;;  %v710_v23 = vld [vmem:[%s1200_s1 + $0x78] sm:$0xf0]  ;;  %v693_v24 = vor.u32 %v837_v19, %v692_v18  ;;  %v700_v27 = vld [vmem:[%s1200_s1 + $0x60] sm:$0xf]  ;;  %v840_v28 = vld [vmem:[%s1200_s1 + $0x6c] sm:$0xf0] }
  0x1b   :  { %425 = vmatpush.bf16.msra.mxu1 %v851_v34  ;;  %542 = vperm.xlu1 %882, %v524_v36   ;;  %v713_v25 = vor.u32 %v839_v22, %v710_v23  ;;  %v585_v26 = vld [vmem:[%s1202_s4 + $0x38] sm:$0xff]  ;;  %v838_v29 = vld [vmem:[%s1200_s1 + $0x64] sm:$0xf]  ;;  %v702_v30 = vld [vmem:[%s1200_s1 + $0x70] sm:$0xf0]  ;;  %v701_v33 = vor.u32 %v840_v28, %v700_v27 }
  0x1c   :  { %454 = vmatpush.bf16.msra.mxu2 %v859_v35  ;;  %537 = vperm.xlu0 %881, %v523_v37   ;;  %v708_v31 = vld [vmem:[%s1200_s1 + $0x68] sm:$0xf]  ;;  %v841_v32 = vld [vmem:[%s1200_s1 + $0x74] sm:$0xf0]  ;;  %v705_v34 = vor.u32 %v838_v29, %v702_v30 }
  0x1d   :  { %v709_v35 = vor.u32 %v841_v32, %v708_v31 }
  0x1e   :  { %397 = vmatpush.bf16.msra.mxu0 %v842_v38 }
  0x1f   :  { %426 = vmatpush.bf16.msra.mxu1 %v850_v39 }
  0x20   :  { %455 = vmatpush.bf16.msra.mxu2 %v858_v45  ;;  %547 = vperm.xlu2 %883, %v525_v56  }
  0x21   :  { %398 = vmatmul.bf16.vlgmr.msra.gmra.mxu0 %v653_v48  ;;  %823 = vmatmul.msk.bf16.gmra.mxu3 %vm377_vm0, %v681_v54 }
  0x22   :  { %427 = vmatmul.bf16.vlgmr.msra.gmra.mxu1 %v657_v49 }
  0x23   :  { %456 = vmatmul.bf16.vlgmr.msra.gmra.mxu2 %v661_v52  ;;  %557 = vperm.xlu1 %882, %v527_v53  }
  0x24   :  { %552 = vperm.xlu0 %881, %v526_v55  }
  0x28   :  { %562 = vperm.xlu2 %883, %v528_v63  }
  0x2b   :  { %588 = vperm.xlu1 %882, %v578_v57  }
  0x2c   :  { %567 = vperm.xlu0 %881, %v529_v58  }
  0x30   :  { %593 = vperm.xlu2 %883, %v579_v10  }
  0x31   :  { %403 = vmatmul.bf16.gmra.mxu0 %v669_v2  ;;  %824 = vmatmul.msk.bf16.gmra.mxu3 %vm377_vm0, %v697_v8 }
  0x32   :  { %432 = vmatmul.bf16.gmra.mxu1 %v673_v3 }
  0x33   :  { %461 = vmatmul.bf16.gmra.mxu2 %v677_v6  ;;  %603 = vperm.xlu1 %882, %v581_v7  }
  0x34   :  { %598 = vperm.xlu0 %881, %v580_v9  }
  0x38   :  { %608 = vperm.xlu2 %883, %v582_v17  }
  0x3b   :  { %618 = vperm.xlu1 %882, %v584_v11  }
  0x3c   :  { %613 = vperm.xlu0 %881, %v583_v12  }
  0x40   :  { %623 = vperm.xlu2 %883, %v585_v26  }
  0x41   :  { %408 = vmatmul.bf16.gmra.mxu0 %v685_v20  ;;  %825 = vmatmul.msk.bf16.gmra.mxu3 %vm377_vm0, %v713_v25 }
  0x42   :  { %437 = vmatmul.bf16.gmra.mxu1 %v689_v21 }
  0x43   :  { %466 = vmatmul.bf16.gmra.mxu2 %v693_v24 }
  0x51   :  { %413 = vmatmul.bf16.gmra.mxu0 %v701_v33 }
  0x52   :  { %442 = vmatmul.bf16.gmra.mxu1 %v705_v34 }
  0x53   :  { %471 = vmatmul.bf16.gmra.mxu2 %v709_v35 }
  0x62   :  { %v122_v37 = vpop.permute.xlu2 %121 }
  0x6a   :  { %v127_v43 = vpop.permute.xlu2 %126 }
  0x72   :  { %v533_v50 = vpop.permute.xlu2 %532 }
  0x75   :  { %v112_v41 = vpop.permute.xlu1 %111 }
  0x76   :  { %v102_v36 = vpop.permute.xlu0 %101 }
  0x7a   :  { %v1172_v58 = vpop.permute.xlu2 %547 }
  0x7d   :  { %v117_v49 = vpop.permute.xlu1 %116 }
  0x7e   :  { %v107_v39 = vpop.permute.xlu0 %106 }
  0x82   :  { %v1178_v6 = vpop.permute.xlu2 %562 }
  0x85   :  { %v1170_v56 = vpop.permute.xlu1 %136 }
  0x86   :  { %v132_v45 = vpop.permute.xlu0 %131 }
  0x8a   :  { %v594_v23 = vpop.permute.xlu2 %593 }
  0x8d   :  { %v1176_v0 = vpop.permute.xlu1 %542 }
  0x8e   :  { %v538_v54 = vpop.permute.xlu0 %537 }
  0x94   :  { %v486_v38 = vpop.f32.mrf.mxu3 }
  0x95   :  { %v558_v17 = vpop.permute.xlu1 %557 }
  0x96   :  { %v553_v62 = vpop.permute.xlu0 %552 }
  0x9c   :  { %v488_v44 = vpop.f32.mrf.mxu3 }
  0x9e   :  { %v399_v40 = vpop.f32.mrf.mxu0  ;;  %v1180_v10 = vpop.permute.xlu0 %567 }
  0x9f   :  { %v428_v42 = vpop.f32.mrf.mxu1  ;;  %v400_v63 = vadd.f32 %v399_v40, %v102_v36  ;;  %v589_v40 = vpop.permute.xlu1 %588 }
  0xa1   :  { %v429_v4 = vadd.f32 %v428_v42, %v400_v63 }
  0xa4   :  { %v1168_v52 = vpop.f32.mrf.mxu3 }
  0xa6   :  { %v457_v46 = vpop.f32.mrf.mxu2  ;;  %v401_v47 = vpop.f32.mrf.mxu0 }
  0xa7   :  { %v430_v48 = vpop.f32.mrf.mxu1  ;;  %v402_v1 = vadd.f32 %v401_v47, %v107_v39  ;;  %v458_v11 = vadd.f32 %v457_v46, %v429_v4  ;;  %v1182_v29 = vpop.permute.xlu0 %598 }
  0xa9   :  { %v431_v8 = vadd.f32 %v430_v48, %v402_v1  ;;  %v487_v18 = vadd.f32 %v486_v38, %v458_v11  ;;  %v609_v1 = vpop.permute.xlu2 %608 }
  0xab   :  { %v506_v25 = vmul.f32 0.01, %v487_v18 }
  0xac   :  { %v1174_v61 = vpop.f32.mrf.mxu3 }
  0xad   :  { %v514_v36 = vmax.f32 %v487_v18, %v506_v25 }
  0xae   :  { %v459_v51 = vpop.f32.mrf.mxu2  ;;  %v404_v53 = vpop.f32.mrf.mxu0 }
  0xaf   :  { %v433_v55 = vpop.f32.mrf.mxu1  ;;  %v460_v12 = vadd.f32 %v459_v51, %v431_v8  ;;  %v405_v30 = vadd.f32 %v404_v53, %v112_v41  ;;  %v570_v48 = vmul.f32 %v533_v50, %v514_v36 }
  0xb1   :  { %v489_v19 = vadd.f32 %v488_v44, %v460_v12  ;;  %v434_v42 = vadd.f32 %v433_v55, %v405_v30  ;;  %v614_v55 = vpop.permute.xlu0 %613 }
  0xb3   :  { %v507_v26 = vmul.f32 0.01, %v489_v19 }
  0xb4   :  { %v496_v9 = vpop.f32.mrf.mxu3 }
  0xb6   :  { %v462_v57 = vpop.f32.mrf.mxu2  ;;  %v406_v59 = vpop.f32.mrf.mxu0 }
  0xb7   :  { %v435_v60 = vpop.f32.mrf.mxu1  ;;  %v407_v32 = vadd.f32 %v406_v59, %v117_v49  ;;  %v463_v63 = vadd.f32 %v462_v57, %v434_v42 }
  0xb9   :  { %v436_v44 = vadd.f32 %v435_v60, %v407_v32  ;;  %v492_v60 = vadd.f32 %v1168_v52, %v463_v63  ;;  %v624_v32 = vpop.permute.xlu2 %623 }
  0xbc   :  { %v498_v27 = vpop.f32.mrf.mxu3 }
  0xbe   :  { %v464_v2 = vpop.f32.mrf.mxu2  ;;  %v409_v3 = vpop.f32.mrf.mxu0 }
  0xbf   :  { %v438_v5 = vpop.f32.mrf.mxu1  ;;  %v410_v7 = vadd.f32 %v409_v3, %v122_v37  ;;  %v515_v37 = vmax.f32 %v489_v19, %v507_v26  ;;  %v465_v41 = vadd.f32 %v464_v2, %v436_v44 }
  0xc1   :  { %v439_v13 = vadd.f32 %v438_v5, %v410_v7  ;;  %v571_v51 = vmul.f32 %v538_v54, %v515_v37 }
  0xc4   :  { %v501_v59 = vpop.f32.mrf.mxu3 }
  0xc6   :  { %v467_v14 = vpop.f32.mrf.mxu2  ;;  %v411_v16 = vpop.f32.mrf.mxu0 }
  0xc7   :  { %v468_v15 = vadd.f32 %v467_v14, %v439_v13  ;;  %v440_v20 = vpop.f32.mrf.mxu1  ;;  %v412_v22 = vadd.f32 %v411_v16, %v127_v43  ;;  %v604_v13 = vpop.permute.xlu1 %603 }
  0xc9   :  { %v497_v21 = vadd.f32 %v496_v9, %v468_v15  ;;  %v441_v28 = vadd.f32 %v440_v20, %v412_v22  ;;  %v627_v9 = vadd.f32 %v594_v23, %v571_v51  ;;  %v508_v15 = vmul.f32 0.01, %v492_v60 }
  0xcb   :  { %v510_v24 = vmul.f32 0.01, %v497_v21 }
  0xcc   :  { %v503_v20 = vpop.f32.mrf.mxu3 }
  0xcd   :  { %v518_v33 = vmax.f32 %v497_v21, %v510_v24  ;;  %v516_v21 = vmax.f32 %v492_v60, %v508_v15 }
  0xce   :  { %v469_v31 = vpop.f32.mrf.mxu2  ;;  %v414_v35 = vpop.f32.mrf.mxu0 }
  0xcf   :  { %v470_v34 = vadd.f32 %v469_v31, %v441_v28  ;;  %v415_v39 = vadd.f32 %v414_v35, %v132_v45  ;;  %v443_v43 = vpop.f32.mrf.mxu1  ;;  %v574_v46 = vmul.f32 %v553_v62, %v518_v33  ;;  %v626_v45 = vadd.f32 %v589_v40, %v570_v48  ;;  %v619_v28 = vpop.permute.xlu1 %618 }
  0xd0   :  { %v494_v62 = vadd.f32 %v1174_v61, %v465_v41  ;;  %v572_v25 = vmul.f32 %v1176_v0, %v516_v21 }
  0xd1   :  { %v499_v38 = vadd.f32 %v498_v27, %v470_v34  ;;  %v444_v49 = vadd.f32 %v443_v43, %v415_v39  ;;  %v630_v4 = vadd.f32 %v609_v1, %v574_v46 }
  0xd2   :  { %v509_v16 = vmul.f32 0.01, %v494_v62  ;;  %v628_v33 = vadd.f32 %v1182_v29, %v572_v25 }
  0xd3   :  { %v511_v47 = vmul.f32 0.01, %v499_v38  ;;  %v634_v2 = vmax.f32 %v626_v45, %v630_v4 }
  0xd4   :  { %v517_v22 = vmax.f32 %v494_v62, %v509_v16 }
  0xd5   :  { %v519_v53 = vmax.f32 %v499_v38, %v511_v47 }
  0xd6   :  { %v472_v3 = vpop.f32.mrf.mxu2  ;;  %v416_v8 = vpop.f32.mrf.mxu0  ;;  %v573_v26 = vmul.f32 %v1172_v58, %v517_v22 }
  0xd7   :  { %v575_v5 = vmul.f32 %v558_v17, %v519_v53  ;;  %v473_v7 = vadd.f32 %v472_v3, %v444_v49  ;;  %v417_v57 = vadd.f32 %v416_v8, %v1170_v56  ;;  %v445_v14 = vpop.f32.mrf.mxu1 }
  0xd8   :  { %v629_v34 = vadd.f32 %v604_v13, %v573_v26 }
  0xd9   :  { %v631_v50 = vadd.f32 %v614_v55, %v575_v5  ;;  %v502_v54 = vadd.f32 %v501_v59, %v473_v7  ;;  %v446_v18 = vadd.f32 %v445_v14, %v417_v57 }
  0xdb   :  { %v635_v11 = vmax.f32 %v627_v9, %v631_v50  ;;  %v512_v12 = vmul.f32 0.01, %v502_v54 }
  0xdd   :  { %v872_v17 = vpack.c.bf16 %v635_v11, %v634_v2  ;;  %v520_v52 = vmax.f32 %v502_v54, %v512_v12 }
  0xde   :  { %v474_v19 = vpop.f32.mrf.mxu2 }
  0xdf   :  { %873 = vst [vmem:[%s1203_s5] sm:$0xff] %v872_v17   ;;  %v475_v61 = vadd.f32 %v474_v19, %v446_v18  ;;  %v576_v23 = vmul.f32 %v1178_v6, %v520_v52 }
  0xe1   :  { %v504_v56 = vadd.f32 %v503_v20, %v475_v61  ;;  %v632_v30 = vadd.f32 %v619_v28, %v576_v23 }
  0xe3   :  { %v513_v24 = vmul.f32 0.01, %v504_v56  ;;  %v636_v36 = vmax.f32 %v628_v33, %v632_v30 }
  0xe5   :  { %v521_v27 = vmax.f32 %v504_v56, %v513_v24 }
  0xe7   :  { %v577_v31 = vmul.f32 %v1180_v10, %v521_v27 }
  0xe9   :  { %v633_v35 = vadd.f32 %v624_v32, %v577_v31 }
  0xeb   :  { %v637_v37 = vmax.f32 %v629_v34, %v633_v35 }
  0xed   :  { %v877_v38 = vpack.c.bf16 %v637_v37, %v636_v36 }
  0xef   :  { %879 = vst [vmem:[%s1203_s5 + $0x8] sm:$0xff] %v877_v38  }

// kernel: deep_location8_forward.5
= control target key start
LH: loop header
LB: loop body
LE: loop exit
PB: predicated region body
PF: predicated region fallthrough
CT: control target
= control target key end

     0   :  { %12 = vsyncpa [#allocation4], 0  ;;  %s852_s24 = smov 0   ;;  %s962_s0 = inlined_call_operand.vmem [shape: bf16[32,2,64], index: 0, kind: input, shape index: {}]   ;;  %s963_s1 = inlined_call_operand.vmem [shape: bf16[32,64,128], index: 1, kind: input, shape index: {}]   ;;  %s964_s2 = inlined_call_operand.vmem [shape: f32[1,128], index: 2, kind: input, shape index: {}]   ;;  %s965_s3 = inlined_call_operand.vmem [shape: f32[1,128], index: 3, kind: input, shape index: {}]   ;;  %s966_s4 = inlined_call_operand.vmem [shape: f32[1,128], index: 4, kind: input, shape index: {}]   ;;  %s967_s5 = inlined_call_operand.vmem [shape: f32[128,2], index: 5, kind: input, shape index: {}]   ;;  %s968_s6 = inlined_call_operand.vmem [shape: f32[1,2], index: 6, kind: input, shape index: {}]   ;;  %s969_s7 = inlined_call_operand.hbm [shape: f32[2,2], index: 7, kind: output, shape index: {}]  }
   0x1 LB: > { %s858_s25 = sadd.s32 4294967295, %s808_s24   ;;  %p627_p0 = scmp.ge.s32.totalorder %s808_s24, 1  ;;  %s808_s24 = sphi %s852_s24, %s18_s24  }
   0x2   : > { %p245_p1 = scmp.lt.s32.totalorder %s808_s24, 9 }
   0x4   : > { %p246_p2 = pnand %p627_p0, %p245_p1 }
   0x5   : > { %s628_s26 = sshll.u32 (!%p246_p2), %s858_s25, 2  ;;  %p632_p4 = scmp.ne.s32.totalorder (!%p246_p2), %s858_s25, 0 }
   0x6   : > { %249 = sbr.rel (%p246_p2) target bundleno = 343 (0x157), region = 48  ;;  %p278_p3 = scmp.lt.s32.totalorder (!%p246_p2), %s628_s26, 31 }
   0xb   : > { %s971_s26 = smov (!%p278_p3, %s628_s26), 31  ;;  %293 = sbr.rel (%p632_p4) target bundleno = 18 (0x12), region = 52 }
   0xc   : > { %s866_s29 = scalar_lea.vmem %s962_s0, %s971_s26  ;;  %s733_s30 = sshll.u32 %s971_s26, 5 }
   0xd   : > { %s871_s10 = scalar_lea.vmem %s963_s1, %s733_s30 }
  0x10   : > { %v810_v0 = vmov 0.0  }
  0x11   : > { %294 = vst [vmem:[#allocation2] sm:$0x3] %v810_v0 }
  0x12 PF: > { %v741_v1 = vld [vmem:[%s871_s10 + $0x38] sm:$0xff]  ;;  %v740_v5 = vld [vmem:[%s871_s10 + $0x30] sm:$0xff]  ;;  %v739_v9 = vld [vmem:[%s871_s10 + $0x28] sm:$0xff]  ;;  %vm339_vm0 = vcmask 523264   ;;  %p728_p5 = scmp.ne.s32.totalorder %s858_s25, 7 }
  0x13   : > { %v737_v2 = vld [vmem:[%s871_s10 + $0x18] sm:$0xff]  ;;  %347 = vmatpush.bf16.msra.mxu0 %v741_v1  ;;  %v736_v6 = vld [vmem:[%s871_s10 + $0x10] sm:$0xff]  ;;  %v735_v10 = vld [vmem:[%s871_s10 + $0x8] sm:$0xff] }
  0x14   : > { %v745_v3 = vld [vmem:[%s871_s10 + $0x58] sm:$0xff]  ;;  %387 = vmatpush.bf16.msra.mxu1 %v737_v2  ;;  %v744_v7 = vld [vmem:[%s871_s10 + $0x50] sm:$0xff]  ;;  %v743_v11 = vld [vmem:[%s871_s10 + $0x48] sm:$0xff] }
  0x15   : > { %v749_v4 = vld [vmem:[%s871_s10 + $0x78] sm:$0xff]  ;;  %438 = vmatpush.bf16.msra.mxu2 %v745_v3  ;;  %v748_v8 = vld [vmem:[%s871_s10 + $0x70] sm:$0xff]  ;;  %v747_v12 = vld [vmem:[%s871_s10 + $0x68] sm:$0xff] }
  0x16   : > { %490 = vmatpush.bf16.msra.mxu3 %v749_v4  ;;  %v738_v13 = vld [vmem:[%s871_s10 + $0x20] sm:$0xff] }
  0x17   : > { %348 = vmatpush.bf16.msra.mxu0 %v740_v5  ;;  %v734_v14 = vld [vmem:[%s871_s10] sm:$0xff] }
  0x18   : > { %388 = vmatpush.bf16.msra.mxu1 %v736_v6  ;;  %v742_v15 = vld [vmem:[%s871_s10 + $0x40] sm:$0xff] }
  0x19   : > { %439 = vmatpush.bf16.msra.mxu2 %v744_v7  ;;  %v746_v16 = vld [vmem:[%s871_s10 + $0x60] sm:$0xff] }
  0x1a   : > { %491 = vmatpush.bf16.msra.mxu3 %v748_v8  ;;  %v633_v17 = vld [vmem:[%s866_s29 + $0x1] sm:$0x1]  ;;  %v295_v18 = vld [vmem:[%s866_s29] sm:$0x1]  ;;  %v676_v19 = vld [vmem:[%s866_s29 + $0x2] sm:$0x1] }
  0x1b   : > { %349 = vmatpush.bf16.msra.mxu0 %v739_v9  ;;  %v702_v20 = vld [vmem:[%s866_s29 + $0x3] sm:$0x1]  ;;  %v500_v29 = vld [vmem:[#allocation2] sm:$0x3] }
  0x1c   : > { %389 = vmatpush.bf16.msra.mxu1 %v735_v10 }
  0x1d   : > { %440 = vmatpush.bf16.msra.mxu2 %v743_v11 }
  0x1e   : > { %492 = vmatpush.bf16.msra.mxu3 %v747_v12 }
  0x1f   : > { %350 = vmatpush.bf16.msra.mxu0 %v738_v13 }
  0x20   : > { %390 = vmatpush.bf16.msra.mxu1 %v734_v14 }
  0x21   : > { %441 = vmatpush.bf16.msra.mxu2 %v742_v15 }
  0x22   : > { %493 = vmatpush.bf16.msra.mxu3 %v746_v16  ;;  %658 = vmatmul.msk.bf16.vlgmr.msra.gmra.mxu0 %vm339_vm0, %v633_v17 }
  0x23   : > { %675 = vmatmul.msk.bf16.vlgmr.msra.gmra.mxu1 %vm339_vm0, %v295_v18 }
  0x24   : > { %701 = vmatmul.msk.bf16.vlgmr.msra.gmra.mxu2 %vm339_vm0, %v676_v19 }
  0x25   : > { %727 = vmatmul.msk.bf16.vlgmr.msra.gmra.mxu3 %vm339_vm0, %v702_v20 }
  0x9f   : > { %v352_v21 = vpop.f32.mrf.mxu0 }
  0xa0   : > { %v392_v22 = vpop.f32.mrf.mxu1 }
  0xa1   : > { %v393_v23 = vadd.f32 %v392_v22, %v352_v21 }
  0xa7   : > { %v443_v24 = vpop.f32.mrf.mxu2  ;;  %v354_v27 = vpop.f32.mrf.mxu0 }
  0xa8   : > { %v495_v25 = vpop.f32.mrf.mxu3  ;;  %v447_v26 = vadd.f32 %v443_v24, %v393_v23  ;;  %v394_v28 = vpop.f32.mrf.mxu1 }
  0xaa   : > { %v499_v30 = vadd.f32 %v495_v25, %v447_v26 }
  0xac   : > { %v501_v31 = vadd.f32 %v500_v29, %v499_v30  ;;  %506 = sbr.rel (%p728_p5) target bundleno = 338 (0x152), region = 56 }
  0xae   : > { %502 = vst [vmem:[#allocation2] sm:$0x3] %v501_v31 }
  0xaf   : > { %v445_v32 = vpop.f32.mrf.mxu2 }
  0xb0   : > { %v497_v33 = vpop.f32.mrf.mxu3 }
  0xb1   : > { %v540_v34 = vld [vmem:[%s967_s5 + $0x78] sm:$0xff]  ;;  %v539_v35 = vld [vmem:[%s967_s5 + $0x70] sm:$0xff]  ;;  %v538_v36 = vld [vmem:[%s967_s5 + $0x68] sm:$0xff]  ;;  %vm565_vm1 = vcmask 9216  }
  0xb2   : > { %545 = vmatpush.msra.mxu0 %v540_v34  ;;  %v537_v37 = vld [vmem:[%s967_s5 + $0x60] sm:$0xff]  ;;  %v536_v38 = vld [vmem:[%s967_s5 + $0x58] sm:$0xff]  ;;  %v535_v39 = vld [vmem:[%s967_s5 + $0x50] sm:$0xff] }
  0xb3   : > { %v766_v40 = vld [vmem:[%s964_s2] ss:$0 sm:$0xff]  ;;  %v534_v42 = vld [vmem:[%s967_s5 + $0x48] sm:$0xff]  ;;  %v532_v45 = vld [vmem:[%s967_s5 + $0x38] sm:$0xff] }
  0xb4   : > { %546 = vmatpush.msra.mxu0 %v539_v35  ;;  %v533_v43 = vld [vmem:[%s967_s5 + $0x40] sm:$0xff]  ;;  %v531_v46 = vld [vmem:[%s967_s5 + $0x30] sm:$0xff]  ;;  %v530_v48 = vld [vmem:[%s967_s5 + $0x28] sm:$0xff] }
  0xb5   : > { %v507_v41 = vld [vmem:[#allocation2] sm:$0x3]  ;;  %v528_v52 = vld [vmem:[%s967_s5 + $0x18] sm:$0xff]  ;;  %v527_v53 = vld [vmem:[%s967_s5 + $0x10] sm:$0xff] }
  0xb6   : > { %547 = vmatpush.msra.mxu0 %v538_v36  ;;  %v512_v44 = vadd.f32 %v766_v40, %v507_v41  ;;  %v529_v49 = vld [vmem:[%s967_s5 + $0x20] sm:$0xff]  ;;  %v526_v56 = vld [vmem:[%s967_s5 + $0x8] sm:$0xff] }
  0xb7   : > { %v767_v51 = vld [vmem:[%s965_s3] ss:$0 sm:$0xff] }
  0xb8   : > { %548 = vmatpush.msra.mxu0 %v537_v37  ;;  %v513_v47 = vmul.f32 0.01, %v512_v44  ;;  %v768_v55 = vld [vmem:[%s966_s4] ss:$0 sm:$0xff] }
  0xb9   : > { %v525_v57 = vld [vmem:[%s967_s5] sm:$0xff] }
  0xba   : > { %549 = vmatpush.msra.mxu0 %v536_v38  ;;  %v514_v50 = vmax.f32 %v512_v44, %v513_v47  ;;  %v769_v59 = vld [vmem:[%s968_s6] ss:$0 sm:$0xff] }
  0xbc   : > { %550 = vmatpush.msra.mxu0 %v535_v39  ;;  %v519_v54 = vmul.f32 %v767_v51, %v514_v50 }
  0xbe   : > { %551 = vmatpush.msra.mxu0 %v534_v42  ;;  %v524_v58 = vadd.f32 %v768_v55, %v519_v54 }
  0xc0   : > { %552 = vmatpush.msra.mxu0 %v533_v43 }
  0xc2   : > { %553 = vmatpush.msra.mxu0 %v532_v45 }
  0xc4   : > { %554 = vmatpush.msra.mxu0 %v531_v46 }
  0xc6   : > { %555 = vmatpush.msra.mxu0 %v530_v48 }
  0xc8   : > { %556 = vmatpush.msra.mxu0 %v529_v49 }
  0xca   : > { %557 = vmatpush.msra.mxu0 %v528_v52 }
  0xcc   : > { %558 = vmatpush.msra.mxu0 %v527_v53 }
  0xce   : > { %559 = vmatpush.msra.mxu0 %v526_v56 }
  0xd0   : > { %560 = vmatpush.msra.mxu0 %v525_v57 }
  0xd1   : > { %561 = vmatmul.f32.vlgmr.msra.gmra.mxu0 %v524_v58 }
 0x14e   : > { %v562_v60 = vpop.f32.mrf.mxu0 }
 0x14f   : > { %v563_v61 = vadd.f32 %v769_v59, %v562_v60 }
 0x151   : > { %566 = vst.msk [vmem:[#allocation3] sm:$0x3] %vm565_vm1, %v563_v61 }
 0x152 PF: > { %p754_p6 = scmp.eq.s32.totalorder %s858_s25, 7  ;;  %s811_s9 = smov [#allocation3]  }
 0x153   : > { %s573_s10 = sshll.u32 %s811_s9, 4  ;;  %s575_s13 = sshll.u32 %s969_s7, 4  ;;  %s574_s10 = int_to_ptr.vmem [resolvable:$true] %s573_s10  ;;  %s576_s13 = int_to_ptr.hbm [resolvable:$true] %s575_s13 }
 0x154   : > { %751 = dma.vmem_to_hbm [thread:$0]  (%p754_p6), %s574_s10, 32, %s576_s13, [#allocation4]  }
 0x155   : > { %803 = dma.done.wait (%p754_p6), [#allocation4], 32  }
 0x156   : > { %805 = vsyncadd (%p754_p6), [#allocation4], 4294967264 }
 0x157 PF: > { %s18_s24 = sadd.s32 1, %s808_s24  }
 0x158   : > { %p15_p7 = scmp.ge.s32.totalorder %s18_s24, 10  }
 0x15a   :  { %17 = sbr.rel (!%p15_p7) target bundleno = 1 (0x1), region = 92 }
 0x15f   :  { %589 = vsyncpa [#allocation4], 1 }
 0x160   :  { %591 = vsyncpa [#allocation4 + $0x1], 1 }

</bundles_post_ra>
